<compile_context>
chip_gen: v5e
topology: v5e:2x2
jax: 0.10.0
libtpu: 0.0.40
codegen_flags: <defaults>
</compile_context>

<pallas_src>
import math

import jax
import jax.numpy as jnp
from jax.experimental import pallas as pl
from jax.experimental.pallas import tpu as pltpu

# ----------------------- scaled-down ViT configuration -----------------------
BATCH = 2
IN_CH = 3
IMG = 32
PATCH = 16
N_PATCH = (IMG // PATCH) ** 2          # 4
SEQ = N_PATCH + 1                      # 5 (cls token + patches)
SEQ_PAD = 8                            # one (8,128) sublane tile per batch
EMBED = 128
HEADS = 4
HEAD_DIM = EMBED // HEADS              # 32
MLP_HIDDEN = 256
DEPTH = 2
N_CLASSES = 10
HEAD_PAD = 128                         # lane-dense head output, sliced outside
PATCH_VEC = IN_CH * PATCH * PATCH      # 768
LN_EPS = 1e-6
ATTN_SCALE = 1.0 / math.sqrt(HEAD_DIM)


# --------------------------- in-kernel helper math ----------------------------
def _layer_norm(x, g, b):
    """x: [M, D] fp32, g/b: [1, D] fp32."""
    mu = jnp.mean(x, axis=-1, keepdims=True)
    xc = x - mu
    var = jnp.mean(xc * xc, axis=-1, keepdims=True)
    return xc * jax.lax.rsqrt(var + LN_EPS) * g + b


def _matmul_bf16(x_f32, w_bf16):
    """bf16 operands, fp32 accumulation on the MXU."""
    return jnp.dot(x_f32.astype(jnp.bfloat16), w_bf16,
                   preferred_element_type=jnp.float32)


def _gelu_exact(x):
    """Exact erf-GELU (PyTorch nn.GELU default); erf via A&S 7.1.26."""
    z = x * (1.0 / math.sqrt(2.0))
    az = jnp.abs(z)
    t = 1.0 / (1.0 + 0.3275911 * az)
    poly = t * (0.254829592 + t * (-0.284496736 + t * (1.421413741
           + t * (-1.453152027 + t * 1.061405429))))
    erf_abs = 1.0 - poly * jnp.exp(-az * az)
    erf_z = jnp.where(z >= 0.0, erf_abs, -erf_abs)
    return 0.5 * x * (1.0 + erf_z)


# ------------------------------ fused ViT kernel ------------------------------
# One grid step == one batch element (8 sequence rows, sublane-tile aligned).
def _vit_kernel(xp_ref, patch_w_ref, base_ref, head_mask_ref, key_bias_ref,
                ln1_g_ref, ln1_b_ref, qkv_w_ref, qkv_b_ref,
                proj_w_ref, proj_b_ref, ln2_g_ref, ln2_b_ref,
                fc1_w_ref, fc1_b_ref, fc2_w_ref, fc2_b_ref,
                lnf_g_ref, lnf_b_ref, head_w_ref, head_b_ref,
                out_ref):
    head_mask = head_mask_ref[...]          # [HEADS, 1, EMBED] {0,1} fp32
    key_bias = key_bias_ref[...]            # [1, SEQ_PAD] additive mask (pad keys)

    # ---- patch embedding + cls/pos assembly in one matmul + add ----
    # xp rows: 0 = zeros (cls slot), 1..4 = patch vectors, 5..7 = zero pad.
    # base rows: 0 = cls + pos[0], 1..4 = pos[1:5] + patch_b, 5..7 = 0.
    xs = _matmul_bf16(xp_ref[...], patch_w_ref[...]) + base_ref[...]   # [8, E]

    # ---- transformer blocks (weights resident in VMEM, xs lives in vregs) ----
    for d in range(DEPTH):
        # --- multi-head self-attention (pre-norm) ---
        h = _layer_norm(xs, ln1_g_ref[d], ln1_b_ref[d])                # [8, E]
        qkv = _matmul_bf16(h, qkv_w_ref[d]) + qkv_b_ref[d]             # [8, 3E]
        q = qkv[:, 0:EMBED]                                            # lane-aligned
        k = qkv[:, EMBED:2 * EMBED].astype(jnp.bfloat16)
        v = qkv[:, 2 * EMBED:3 * EMBED].astype(jnp.bfloat16)

        # Head-stacked, lane-masked Q: rows [h*8:(h+1)*8] hold q with only
        # head h's 32 lanes nonzero -> scores for all heads in ONE matmul.
        q_all = (q[None, :, :] * head_mask).reshape(HEADS * SEQ_PAD, EMBED)
        s = jax.lax.dot_general(
            q_all.astype(jnp.bfloat16), k, (((1,), (1,)), ((), ())),
            preferred_element_type=jnp.float32) * ATTN_SCALE           # [H*8, 8]
        s = s + key_bias                       # mask pad key positions
        s = s - jnp.max(s, axis=-1, keepdims=True)
        p = jnp.exp(s)
        p = p * pl.reciprocal(jnp.sum(p, axis=-1, keepdims=True), approx=True)

        # ONE P@V matmul for all heads, then recombine per-head lanes with
        # masks + a vreg sum (no lane extraction, no scratch scatters).
        o_all = jnp.dot(p.astype(jnp.bfloat16), v,
                        preferred_element_type=jnp.float32)            # [H*8, E]
        o = jnp.sum(o_all.reshape(HEADS, SEQ_PAD, EMBED) * head_mask, axis=0)

        xs = xs + _matmul_bf16(o, proj_w_ref[d]) + proj_b_ref[d]       # residual

        # --- MLP (pre-norm) ---
        h = _layer_norm(xs, ln2_g_ref[d], ln2_b_ref[d])
        h = _matmul_bf16(h, fc1_w_ref[d]) + fc1_b_ref[d]
        h = _gelu_exact(h)
        xs = xs + _matmul_bf16(h, fc2_w_ref[d]) + fc2_b_ref[d]         # residual

    # ---- final LayerNorm + classification head on the cls row only ----
    cls = _layer_norm(xs[0:1, :], lnf_g_ref[...], lnf_b_ref[...])      # [1, E]
    out_ref[...] = _matmul_bf16(cls, head_w_ref[...]) + head_b_ref[...]  # [1, 128]


# ------------------------------ parameter init --------------------------------
def init_params(key):
    ks = iter(jax.random.split(key, 16 + 8 * DEPTH))
    std = 0.02

    def nrm(shape):
        return std * jax.random.normal(next(ks), shape, dtype=jnp.float32)

    params = {
        "patch_w": nrm((PATCH_VEC, EMBED)),   # conv weight flattened (C, ph, pw)
        "patch_b": jnp.zeros((EMBED,), jnp.float32),
        "cls_token": nrm((1, 1, EMBED)),
        "pos_embed": nrm((1, SEQ, EMBED)),
        "ln_g": jnp.ones((EMBED,), jnp.float32),
        "ln_b": jnp.zeros((EMBED,), jnp.float32),
        "head_w": nrm((EMBED, N_CLASSES)),
        "head_b": jnp.zeros((N_CLASSES,), jnp.float32),
        "blocks": [],
    }
    for _ in range(DEPTH):
        params["blocks"].append({
            "ln1_g": jnp.ones((EMBED,), jnp.float32),
            "ln1_b": jnp.zeros((EMBED,), jnp.float32),
            "qkv_w": nrm((EMBED, 3 * EMBED)),
            "qkv_b": jnp.zeros((3 * EMBED,), jnp.float32),
            "proj_w": nrm((EMBED, EMBED)),
            "proj_b": jnp.zeros((EMBED,), jnp.float32),
            "ln2_g": jnp.ones((EMBED,), jnp.float32),
            "ln2_b": jnp.zeros((EMBED,), jnp.float32),
            "fc1_w": nrm((EMBED, MLP_HIDDEN)),
            "fc1_b": jnp.zeros((MLP_HIDDEN,), jnp.float32),
            "fc2_w": nrm((MLP_HIDDEN, EMBED)),
            "fc2_b": jnp.zeros((EMBED,), jnp.float32),
        })
    return params


def pack_params(params):
    """Pack weights once (outside jit): bf16 matmul weights, stacked per-depth,
    plus precomputed cls/pos/bias base row block, head lane masks and key mask."""
    bf16, f32 = jnp.bfloat16, jnp.float32
    blocks = params["blocks"]

    def stackw(name):
        return jnp.stack([b[name] for b in blocks], 0).astype(bf16)

    def stackb(name, n):
        return jnp.stack([b[name] for b in blocks], 0).reshape(DEPTH, 1, n).astype(f32)

    # base[0] = cls + pos[0]; base[1:SEQ] = pos[1:SEQ] + patch_b; pad rows = 0.
    cls = params["cls_token"].reshape(EMBED)
    pos = params["pos_embed"].reshape(SEQ, EMBED)
    base = jnp.zeros((SEQ_PAD, EMBED), f32)
    base = base.at[0].set(cls + pos[0])
    base = base.at[1:SEQ].set(pos[1:SEQ] + params["patch_b"][None, :])

    # Per-head lane masks [HEADS, 1, EMBED] and additive key-pad mask [1, SEQ_PAD].
    lane = jnp.arange(EMBED)
    head_mask = jnp.stack(
        [((lane >= h * HEAD_DIM) & (lane < (h + 1) * HEAD_DIM)) for h in range(HEADS)],
        0).astype(f32).reshape(HEADS, 1, EMBED)
    key_bias = jnp.where(jnp.arange(SEQ_PAD) < SEQ, 0.0, -1e30)
    key_bias = key_bias.reshape(1, SEQ_PAD).astype(f32)

    head_w = jnp.pad(params["head_w"],
                     ((0, 0), (0, HEAD_PAD - N_CLASSES))).astype(bf16)
    head_b = jnp.pad(params["head_b"],
                     (0, HEAD_PAD - N_CLASSES)).reshape(1, HEAD_PAD).astype(f32)

    return (
        params["patch_w"].astype(bf16),
        base, head_mask, key_bias,
        stackb("ln1_g", EMBED), stackb("ln1_b", EMBED),
        stackw("qkv_w"), stackb("qkv_b", 3 * EMBED),
        stackw("proj_w"), stackb("proj_b", EMBED),
        stackb("ln2_g", EMBED), stackb("ln2_b", EMBED),
        stackw("fc1_w"), stackb("fc1_b", MLP_HIDDEN),
        stackw("fc2_w"), stackb("fc2_b", EMBED),
        params["ln_g"].reshape(1, EMBED).astype(f32),
        params["ln_b"].reshape(1, EMBED).astype(f32),
        head_w, head_b,
    )


# -------------------------------- forward pass --------------------------------
def vit_forward(x, packed):
    # Patch embedding unfold: conv(k=p, stride=p) == reshape/transpose + matmul.
    # Patch vector ordering is (C, ph, pw), matching the flattened conv kernel.
    p = PATCH
    xp = x.reshape(BATCH, IN_CH, IMG // p, p, IMG // p, p)
    xp = xp.transpose(0, 2, 4, 1, 3, 5).reshape(BATCH, N_PATCH, PATCH_VEC)
    # Row 0 reserved for the cls token, rows SEQ..SEQ_PAD-1 are zero padding,
    # so each batch element is exactly one (8,128)-aligned sequence tile.
    xp = jnp.pad(xp, ((0, 0), (1, SEQ_PAD - SEQ), (0, 0)))

    def full_spec(a):
        # Resident (replicated) operand: full block, constant index map.
        return pl.BlockSpec(a.shape, lambda b, _n=a.ndim: (0,) * _n)

    in_specs = [pl.BlockSpec((None, SEQ_PAD, PATCH_VEC), lambda b: (b, 0, 0))]
    in_specs += [full_spec(a) for a in packed]

    out = pl.pallas_call(
        _vit_kernel,
        grid=(BATCH,),
        out_shape=jax.ShapeDtypeStruct((BATCH, 1, HEAD_PAD), jnp.float32),
        in_specs=in_specs,
        out_specs=pl.BlockSpec((None, 1, HEAD_PAD), lambda b: (b, 0, 0)),
        compiler_params=pltpu.CompilerParams(
            dimension_semantics=("parallel",)),   # batch elems -> both TCs on v7x
    )(xp, *packed)
    return out[:, 0, :N_CLASSES]


# ------------------------------------ main -------------------------------------
if __name__ == "__main__":
    key = jax.random.PRNGKey(0)
    k_x, k_p = jax.random.split(key)
    x = jax.random.normal(k_x, (BATCH, IN_CH, IMG, IMG), dtype=jnp.float32)
    params = init_params(k_p)
    packed = pack_params(params)

    logits = jax.jit(vit_forward)(x, packed)
    jax.block_until_ready(logits)
    assert logits.shape == (BATCH, N_CLASSES)
    assert bool(jnp.all(jnp.isfinite(logits)))
    print("KERNEL_OK")
</pallas_src>

<mosaic_0001>
module attributes {stable_mosaic.version = 11 : i64} {
  func.func @_vit_kernel(%arg0: i32, %arg1: memref<1x8x768xf32, #tpu.memory_space<vmem>>, %arg2: memref<768x128xbf16, #tpu.memory_space<vmem>>, %arg3: memref<8x128xf32, #tpu.memory_space<vmem>>, %arg4: memref<4x1x128xf32, #tpu.memory_space<vmem>>, %arg5: memref<1x8xf32, #tpu.memory_space<vmem>>, %arg6: memref<2x1x128xf32, #tpu.memory_space<vmem>>, %arg7: memref<2x1x128xf32, #tpu.memory_space<vmem>>, %arg8: memref<2x128x384xbf16, #tpu.memory_space<vmem>>, %arg9: memref<2x1x384xf32, #tpu.memory_space<vmem>>, %arg10: memref<2x128x128xbf16, #tpu.memory_space<vmem>>, %arg11: memref<2x1x128xf32, #tpu.memory_space<vmem>>, %arg12: memref<2x1x128xf32, #tpu.memory_space<vmem>>, %arg13: memref<2x1x128xf32, #tpu.memory_space<vmem>>, %arg14: memref<2x128x256xbf16, #tpu.memory_space<vmem>>, %arg15: memref<2x1x256xf32, #tpu.memory_space<vmem>>, %arg16: memref<2x256x128xbf16, #tpu.memory_space<vmem>>, %arg17: memref<2x1x128xf32, #tpu.memory_space<vmem>>, %arg18: memref<1x128xf32, #tpu.memory_space<vmem>>, %arg19: memref<1x128xf32, #tpu.memory_space<vmem>>, %arg20: memref<128x128xbf16, #tpu.memory_space<vmem>>, %arg21: memref<1x128xf32, #tpu.memory_space<vmem>>, %arg22: memref<1x1x128xf32, #tpu.memory_space<vmem>>) attributes {dimension_semantics = [#tpu.dimension_semantics<parallel>], iteration_bounds = array<i64: 2>, scalar_prefetch = 0 : i64, scratch_operands = 0 : i64, tpu.core_type = #tpu.core_type<tc>, window_params = [{transform_indices = @transform_0, window_bounds = array<i64: 1, 8, 768>}, {pipeline_mode = #tpu.pipeline_mode<synchronous>, transform_indices = @transform_1, window_bounds = array<i64: 768, 128>}, {pipeline_mode = #tpu.pipeline_mode<synchronous>, transform_indices = @transform_2, window_bounds = array<i64: 8, 128>}, {pipeline_mode = #tpu.pipeline_mode<synchronous>, transform_indices = @transform_3, window_bounds = array<i64: 4, 1, 128>}, {pipeline_mode = #tpu.pipeline_mode<synchronous>, transform_indices = @transform_4, window_bounds = array<i64: 1, 8>}, {pipeline_mode = #tpu.pipeline_mode<synchronous>, transform_indices = @transform_5, window_bounds = array<i64: 2, 1, 128>}, {pipeline_mode = #tpu.pipeline_mode<synchronous>, transform_indices = @transform_6, window_bounds = array<i64: 2, 1, 128>}, {pipeline_mode = #tpu.pipeline_mode<synchronous>, transform_indices = @transform_7, window_bounds = array<i64: 2, 128, 384>}, {pipeline_mode = #tpu.pipeline_mode<synchronous>, transform_indices = @transform_8, window_bounds = array<i64: 2, 1, 384>}, {pipeline_mode = #tpu.pipeline_mode<synchronous>, transform_indices = @transform_9, window_bounds = array<i64: 2, 128, 128>}, {pipeline_mode = #tpu.pipeline_mode<synchronous>, transform_indices = @transform_10, window_bounds = array<i64: 2, 1, 128>}, {pipeline_mode = #tpu.pipeline_mode<synchronous>, transform_indices = @transform_11, window_bounds = array<i64: 2, 1, 128>}, {pipeline_mode = #tpu.pipeline_mode<synchronous>, transform_indices = @transform_12, window_bounds = array<i64: 2, 1, 128>}, {pipeline_mode = #tpu.pipeline_mode<synchronous>, transform_indices = @transform_13, window_bounds = array<i64: 2, 128, 256>}, {pipeline_mode = #tpu.pipeline_mode<synchronous>, transform_indices = @transform_14, window_bounds = array<i64: 2, 1, 256>}, {pipeline_mode = #tpu.pipeline_mode<synchronous>, transform_indices = @transform_15, window_bounds = array<i64: 2, 256, 128>}, {pipeline_mode = #tpu.pipeline_mode<synchronous>, transform_indices = @transform_16, window_bounds = array<i64: 2, 1, 128>}, {pipeline_mode = #tpu.pipeline_mode<synchronous>, transform_indices = @transform_17, window_bounds = array<i64: 1, 128>}, {pipeline_mode = #tpu.pipeline_mode<synchronous>, transform_indices = @transform_18, window_bounds = array<i64: 1, 128>}, {pipeline_mode = #tpu.pipeline_mode<synchronous>, transform_indices = @transform_19, window_bounds = array<i64: 128, 128>}, {pipeline_mode = #tpu.pipeline_mode<synchronous>, transform_indices = @transform_20, window_bounds = array<i64: 1, 128>}, {transform_indices = @transform_21, window_bounds = array<i64: 1, 1, 128>}]} {
    %c0 = arith.constant 0 : index
    %c0_0 = arith.constant 0 : index
    %c0_1 = arith.constant 0 : index
    %0 = vector.load %arg4[%c0, %c0_0, %c0_1] : memref<4x1x128xf32, #tpu.memory_space<vmem>>, vector<4x1x128xf32>
    %c0_2 = arith.constant 0 : index
    %c0_3 = arith.constant 0 : index
    %1 = vector.load %arg5[%c0_2, %c0_3] : memref<1x8xf32, #tpu.memory_space<vmem>>, vector<1x8xf32>
    %c0_4 = arith.constant 0 : index
    %c0_5 = arith.constant 0 : index
    %c0_6 = arith.constant 0 : index
    %2 = vector.load %arg1[%c0_4, %c0_5, %c0_6] : memref<1x8x768xf32, #tpu.memory_space<vmem>>, vector<1x8x768xf32>
    %3 = vector.shape_cast %2 : vector<1x8x768xf32> to vector<8x768xf32>
    %c0_7 = arith.constant 0 : index
    %c0_8 = arith.constant 0 : index
    %4 = vector.load %arg2[%c0_7, %c0_8] : memref<768x128xbf16, #tpu.memory_space<vmem>>, vector<768x128xbf16>
    %5 = arith.truncf %3 : vector<8x768xf32> to vector<8x768xbf16>
    %cst = arith.constant dense<0.000000e+00> : vector<8x128xf32>
    %6 = tpu.matmul %5, %4, %cst {dimension_numbers = #tpu.dot_dimension_numbers<[1], [0], [0], [1], [0, 0, 1, 1], [], []>} : vector<8x768xbf16>, vector<768x128xbf16>, vector<8x128xf32> -> vector<8x128xf32>
    %c0_9 = arith.constant 0 : index
    %c0_10 = arith.constant 0 : index
    %7 = vector.load %arg3[%c0_9, %c0_10] : memref<8x128xf32, #tpu.memory_space<vmem>>, vector<8x128xf32>
    %8 = arith.addf %6, %7 : vector<8x128xf32>
    %c0_11 = arith.constant 0 : index
    %c0_12 = arith.constant 0 : index
    %c0_13 = arith.constant 0 : index
    %9 = vector.load %arg6[%c0_11, %c0_12, %c0_13] : memref<2x1x128xf32, #tpu.memory_space<vmem>>, vector<1x1x128xf32>
    %10 = vector.shape_cast %9 : vector<1x1x128xf32> to vector<1x128xf32>
    %c0_14 = arith.constant 0 : index
    %c0_15 = arith.constant 0 : index
    %c0_16 = arith.constant 0 : index
    %11 = vector.load %arg7[%c0_14, %c0_15, %c0_16] : memref<2x1x128xf32, #tpu.memory_space<vmem>>, vector<1x1x128xf32>
    %12 = vector.shape_cast %11 : vector<1x1x128xf32> to vector<1x128xf32>
    %cst_17 = arith.constant dense<0.000000e+00> : vector<8xf32>
    %13 = vector.multi_reduction <add>, %8, %cst_17 [1] : vector<8x128xf32> to vector<8xf32>
    %14 = vector.shape_cast %13 : vector<8xf32> to vector<8x1xf32>
    %cst_18 = arith.constant 1.280000e+02 : f32
    %15 = vector.broadcast %cst_18 : f32 to vector<8x1xf32>
    %16 = arith.divf %14, %15 : vector<8x1xf32>
    %17 = vector.broadcast %16 : vector<8x1xf32> to vector<8x128xf32>
    %18 = arith.subf %8, %17 : vector<8x128xf32>
    %19 = arith.mulf %18, %18 : vector<8x128xf32>
    %cst_19 = arith.constant dense<0.000000e+00> : vector<8xf32>
    %20 = vector.multi_reduction <add>, %19, %cst_19 [1] : vector<8x128xf32> to vector<8xf32>
    %21 = vector.shape_cast %20 : vector<8xf32> to vector<8x1xf32>
    %cst_20 = arith.constant 1.280000e+02 : f32
    %22 = vector.broadcast %cst_20 : f32 to vector<8x1xf32>
    %23 = arith.divf %21, %22 : vector<8x1xf32>
    %cst_21 = arith.constant 9.99999997E-7 : f32
    %24 = vector.broadcast %cst_21 : f32 to vector<8x1xf32>
    %25 = arith.addf %23, %24 : vector<8x1xf32>
    %26 = math.rsqrt %25 : vector<8x1xf32>
    %27 = vector.broadcast %26 : vector<8x1xf32> to vector<8x128xf32>
    %28 = arith.mulf %18, %27 : vector<8x128xf32>
    %29 = vector.broadcast %10 : vector<1x128xf32> to vector<8x128xf32>
    %30 = arith.mulf %28, %29 : vector<8x128xf32>
    %31 = vector.broadcast %12 : vector<1x128xf32> to vector<8x128xf32>
    %32 = arith.addf %30, %31 : vector<8x128xf32>
    %c0_22 = arith.constant 0 : index
    %c0_23 = arith.constant 0 : index
    %c0_24 = arith.constant 0 : index
    %33 = vector.load %arg8[%c0_22, %c0_23, %c0_24] : memref<2x128x384xbf16, #tpu.memory_space<vmem>>, vector<1x128x384xbf16>
    %34 = vector.shape_cast %33 : vector<1x128x384xbf16> to vector<128x384xbf16>
    %35 = arith.truncf %32 : vector<8x128xf32> to vector<8x128xbf16>
    %cst_25 = arith.constant dense<0.000000e+00> : vector<8x384xf32>
    %36 = tpu.matmul %35, %34, %cst_25 {dimension_numbers = #tpu.dot_dimension_numbers<[1], [0], [0], [1], [0, 0, 1, 1], [], []>} : vector<8x128xbf16>, vector<128x384xbf16>, vector<8x384xf32> -> vector<8x384xf32>
    %c0_26 = arith.constant 0 : index
    %c0_27 = arith.constant 0 : index
    %c0_28 = arith.constant 0 : index
    %37 = vector.load %arg9[%c0_26, %c0_27, %c0_28] : memref<2x1x384xf32, #tpu.memory_space<vmem>>, vector<1x1x384xf32>
    %38 = vector.shape_cast %37 : vector<1x1x384xf32> to vector<1x384xf32>
    %39 = vector.broadcast %38 : vector<1x384xf32> to vector<8x384xf32>
    %40 = arith.addf %36, %39 : vector<8x384xf32>
    %41 = vector.extract_strided_slice %40 {offsets = [0, 0], sizes = [8, 128], strides = [1, 1]} : vector<8x384xf32> to vector<8x128xf32>
    %42 = vector.extract_strided_slice %40 {offsets = [0, 128], sizes = [8, 128], strides = [1, 1]} : vector<8x384xf32> to vector<8x128xf32>
    %43 = arith.truncf %42 : vector<8x128xf32> to vector<8x128xbf16>
    %44 = vector.extract_strided_slice %40 {offsets = [0, 256], sizes = [8, 128], strides = [1, 1]} : vector<8x384xf32> to vector<8x128xf32>
    %45 = arith.truncf %44 : vector<8x128xf32> to vector<8x128xbf16>
    %46 = vector.shape_cast %41 : vector<8x128xf32> to vector<1x8x128xf32>
    %47 = vector.broadcast %46 : vector<1x8x128xf32> to vector<4x8x128xf32>
    %48 = vector.broadcast %0 : vector<4x1x128xf32> to vector<4x8x128xf32>
    %49 = arith.mulf %47, %48 : vector<4x8x128xf32>
    %50 = vector.shape_cast %49 : vector<4x8x128xf32> to vector<32x128xf32>
    %51 = arith.truncf %50 : vector<32x128xf32> to vector<32x128xbf16>
    %cst_29 = arith.constant dense<0.000000e+00> : vector<32x8xf32>
    %52 = tpu.matmul %51, %43, %cst_29 {dimension_numbers = #tpu.dot_dimension_numbers<[1], [1], [0], [0], [0, 0, 1, 0], [], []>} : vector<32x128xbf16>, vector<8x128xbf16>, vector<32x8xf32> -> vector<32x8xf32>
    %cst_30 = arith.constant 0.176776692 : f32
    %53 = vector.broadcast %cst_30 : f32 to vector<32x8xf32>
    %54 = arith.mulf %52, %53 : vector<32x8xf32>
    %55 = vector.broadcast %1 : vector<1x8xf32> to vector<32x8xf32>
    %56 = arith.addf %54, %55 : vector<32x8xf32>
    %cst_31 = arith.constant dense<0xFF800000> : vector<32xf32>
    %57 = vector.multi_reduction <maximumf>, %56, %cst_31 [1] : vector<32x8xf32> to vector<32xf32>
    %58 = vector.shape_cast %57 : vector<32xf32> to vector<32x1xf32>
    %59 = vector.broadcast %58 : vector<32x1xf32> to vector<32x8xf32>
    %60 = arith.subf %56, %59 : vector<32x8xf32>
    %61 = math.exp %60 : vector<32x8xf32>
    %cst_32 = arith.constant dense<0.000000e+00> : vector<32xf32>
    %62 = vector.multi_reduction <add>, %61, %cst_32 [1] : vector<32x8xf32> to vector<32xf32>
    %63 = vector.shape_cast %62 : vector<32xf32> to vector<32x1xf32>
    %64 = tpu.reciprocal %63 {approx = true} : vector<32x1xf32> -> vector<32x1xf32>
    %65 = vector.broadcast %64 : vector<32x1xf32> to vector<32x8xf32>
    %66 = arith.mulf %61, %65 : vector<32x8xf32>
    %67 = arith.truncf %66 : vector<32x8xf32> to vector<32x8xbf16>
    %cst_33 = arith.constant dense<0.000000e+00> : vector<32x128xf32>
    %68 = tpu.matmul %67, %45, %cst_33 {dimension_numbers = #tpu.dot_dimension_numbers<[1], [0], [0], [1], [0, 0, 1, 1], [], []>} : vector<32x8xbf16>, vector<8x128xbf16>, vector<32x128xf32> -> vector<32x128xf32>
    %69 = vector.shape_cast %68 : vector<32x128xf32> to vector<4x8x128xf32>
    %70 = vector.broadcast %0 : vector<4x1x128xf32> to vector<4x8x128xf32>
    %71 = arith.mulf %69, %70 : vector<4x8x128xf32>
    %cst_34 = arith.constant dense<0.000000e+00> : vector<8x128xf32>
    %72 = vector.multi_reduction <add>, %71, %cst_34 [0] : vector<4x8x128xf32> to vector<8x128xf32>
    %c0_35 = arith.constant 0 : index
    %c0_36 = arith.constant 0 : index
    %c0_37 = arith.constant 0 : index
    %73 = vector.load %arg10[%c0_35, %c0_36, %c0_37] : memref<2x128x128xbf16, #tpu.memory_space<vmem>>, vector<1x128x128xbf16>
    %74 = vector.shape_cast %73 : vector<1x128x128xbf16> to vector<128x128xbf16>
    %75 = arith.truncf %72 : vector<8x128xf32> to vector<8x128xbf16>
    %cst_38 = arith.constant dense<0.000000e+00> : vector<8x128xf32>
    %76 = tpu.matmul %75, %74, %cst_38 {dimension_numbers = #tpu.dot_dimension_numbers<[1], [0], [0], [1], [0, 0, 1, 1], [], []>} : vector<8x128xbf16>, vector<128x128xbf16>, vector<8x128xf32> -> vector<8x128xf32>
    %77 = arith.addf %8, %76 : vector<8x128xf32>
    %c0_39 = arith.constant 0 : index
    %c0_40 = arith.constant 0 : index
    %c0_41 = arith.constant 0 : index
    %78 = vector.load %arg11[%c0_39, %c0_40, %c0_41] : memref<2x1x128xf32, #tpu.memory_space<vmem>>, vector<1x1x128xf32>
    %79 = vector.shape_cast %78 : vector<1x1x128xf32> to vector<1x128xf32>
    %80 = vector.broadcast %79 : vector<1x128xf32> to vector<8x128xf32>
    %81 = arith.addf %77, %80 : vector<8x128xf32>
    %c0_42 = arith.constant 0 : index
    %c0_43 = arith.constant 0 : index
    %c0_44 = arith.constant 0 : index
    %82 = vector.load %arg12[%c0_42, %c0_43, %c0_44] : memref<2x1x128xf32, #tpu.memory_space<vmem>>, vector<1x1x128xf32>
    %83 = vector.shape_cast %82 : vector<1x1x128xf32> to vector<1x128xf32>
    %c0_45 = arith.constant 0 : index
    %c0_46 = arith.constant 0 : index
    %c0_47 = arith.constant 0 : index
    %84 = vector.load %arg13[%c0_45, %c0_46, %c0_47] : memref<2x1x128xf32, #tpu.memory_space<vmem>>, vector<1x1x128xf32>
    %85 = vector.shape_cast %84 : vector<1x1x128xf32> to vector<1x128xf32>
    %cst_48 = arith.constant dense<0.000000e+00> : vector<8xf32>
    %86 = vector.multi_reduction <add>, %81, %cst_48 [1] : vector<8x128xf32> to vector<8xf32>
    %87 = vector.shape_cast %86 : vector<8xf32> to vector<8x1xf32>
    %cst_49 = arith.constant 1.280000e+02 : f32
    %88 = vector.broadcast %cst_49 : f32 to vector<8x1xf32>
    %89 = arith.divf %87, %88 : vector<8x1xf32>
    %90 = vector.broadcast %89 : vector<8x1xf32> to vector<8x128xf32>
    %91 = arith.subf %81, %90 : vector<8x128xf32>
    %92 = arith.mulf %91, %91 : vector<8x128xf32>
    %cst_50 = arith.constant dense<0.000000e+00> : vector<8xf32>
    %93 = vector.multi_reduction <add>, %92, %cst_50 [1] : vector<8x128xf32> to vector<8xf32>
    %94 = vector.shape_cast %93 : vector<8xf32> to vector<8x1xf32>
    %cst_51 = arith.constant 1.280000e+02 : f32
    %95 = vector.broadcast %cst_51 : f32 to vector<8x1xf32>
    %96 = arith.divf %94, %95 : vector<8x1xf32>
    %cst_52 = arith.constant 9.99999997E-7 : f32
    %97 = vector.broadcast %cst_52 : f32 to vector<8x1xf32>
    %98 = arith.addf %96, %97 : vector<8x1xf32>
    %99 = math.rsqrt %98 : vector<8x1xf32>
    %100 = vector.broadcast %99 : vector<8x1xf32> to vector<8x128xf32>
    %101 = arith.mulf %91, %100 : vector<8x128xf32>
    %102 = vector.broadcast %83 : vector<1x128xf32> to vector<8x128xf32>
    %103 = arith.mulf %101, %102 : vector<8x128xf32>
    %104 = vector.broadcast %85 : vector<1x128xf32> to vector<8x128xf32>
    %105 = arith.addf %103, %104 : vector<8x128xf32>
    %c0_53 = arith.constant 0 : index
    %c0_54 = arith.constant 0 : index
    %c0_55 = arith.constant 0 : index
    %106 = vector.load %arg14[%c0_53, %c0_54, %c0_55] : memref<2x128x256xbf16, #tpu.memory_space<vmem>>, vector<1x128x256xbf16>
    %107 = vector.shape_cast %106 : vector<1x128x256xbf16> to vector<128x256xbf16>
    %108 = arith.truncf %105 : vector<8x128xf32> to vector<8x128xbf16>
    %cst_56 = arith.constant dense<0.000000e+00> : vector<8x256xf32>
    %109 = tpu.matmul %108, %107, %cst_56 {dimension_numbers = #tpu.dot_dimension_numbers<[1], [0], [0], [1], [0, 0, 1, 1], [], []>} : vector<8x128xbf16>, vector<128x256xbf16>, vector<8x256xf32> -> vector<8x256xf32>
    %c0_57 = arith.constant 0 : index
    %c0_58 = arith.constant 0 : index
    %c0_59 = arith.constant 0 : index
    %110 = vector.load %arg15[%c0_57, %c0_58, %c0_59] : memref<2x1x256xf32, #tpu.memory_space<vmem>>, vector<1x1x256xf32>
    %111 = vector.shape_cast %110 : vector<1x1x256xf32> to vector<1x256xf32>
    %112 = vector.broadcast %111 : vector<1x256xf32> to vector<8x256xf32>
    %113 = arith.addf %109, %112 : vector<8x256xf32>
    %cst_60 = arith.constant 0.707106769 : f32
    %114 = vector.broadcast %cst_60 : f32 to vector<8x256xf32>
    %115 = arith.mulf %113, %114 : vector<8x256xf32>
    %116 = math.absf %115 : vector<8x256xf32>
    %cst_61 = arith.constant 0.327591091 : f32
    %117 = vector.broadcast %cst_61 : f32 to vector<8x256xf32>
    %118 = arith.mulf %117, %116 : vector<8x256xf32>
    %cst_62 = arith.constant 1.000000e+00 : f32
    %119 = vector.broadcast %cst_62 : f32 to vector<8x256xf32>
    %120 = arith.addf %119, %118 : vector<8x256xf32>
    %cst_63 = arith.constant 1.000000e+00 : f32
    %121 = vector.broadcast %cst_63 : f32 to vector<8x256xf32>
    %122 = arith.divf %121, %120 : vector<8x256xf32>
    %cst_64 = arith.constant 1.06140542 : f32
    %123 = vector.broadcast %cst_64 : f32 to vector<8x256xf32>
    %124 = arith.mulf %122, %123 : vector<8x256xf32>
    %cst_65 = arith.constant -1.45315206 : f32
    %125 = vector.broadcast %cst_65 : f32 to vector<8x256xf32>
    %126 = arith.addf %125, %124 : vector<8x256xf32>
    %127 = arith.mulf %122, %126 : vector<8x256xf32>
    %cst_66 = arith.constant 1.42141378 : f32
    %128 = vector.broadcast %cst_66 : f32 to vector<8x256xf32>
    %129 = arith.addf %128, %127 : vector<8x256xf32>
    %130 = arith.mulf %122, %129 : vector<8x256xf32>
    %cst_67 = arith.constant -0.284496725 : f32
    %131 = vector.broadcast %cst_67 : f32 to vector<8x256xf32>
    %132 = arith.addf %131, %130 : vector<8x256xf32>
    %133 = arith.mulf %122, %132 : vector<8x256xf32>
    %cst_68 = arith.constant 0.254829586 : f32
    %134 = vector.broadcast %cst_68 : f32 to vector<8x256xf32>
    %135 = arith.addf %134, %133 : vector<8x256xf32>
    %136 = arith.mulf %122, %135 : vector<8x256xf32>
    %cst_69 = arith.constant 0.000000e+00 : f32
    %137 = vector.broadcast %cst_69 : f32 to vector<8x256xf32>
    %138 = arith.subf %137, %116 : vector<8x256xf32>
    %139 = arith.mulf %138, %116 : vector<8x256xf32>
    %140 = math.exp %139 : vector<8x256xf32>
    %141 = arith.mulf %136, %140 : vector<8x256xf32>
    %cst_70 = arith.constant 1.000000e+00 : f32
    %142 = vector.broadcast %cst_70 : f32 to vector<8x256xf32>
    %143 = arith.subf %142, %141 : vector<8x256xf32>
    %cst_71 = arith.constant 0.000000e+00 : f32
    %144 = vector.broadcast %cst_71 : f32 to vector<8x256xf32>
    %145 = arith.cmpf oge, %115, %144 : vector<8x256xf32>
    %cst_72 = arith.constant 0.000000e+00 : f32
    %146 = vector.broadcast %cst_72 : f32 to vector<8x256xf32>
    %147 = arith.subf %146, %143 : vector<8x256xf32>
    %148 = arith.select %145, %143, %147 : vector<8x256xi1>, vector<8x256xf32>
    %cst_73 = arith.constant 5.000000e-01 : f32
    %149 = vector.broadcast %cst_73 : f32 to vector<8x256xf32>
    %150 = arith.mulf %149, %113 : vector<8x256xf32>
    %cst_74 = arith.constant 1.000000e+00 : f32
    %151 = vector.broadcast %cst_74 : f32 to vector<8x256xf32>
    %152 = arith.addf %151, %148 : vector<8x256xf32>
    %153 = arith.mulf %150, %152 : vector<8x256xf32>
    %c0_75 = arith.constant 0 : index
    %c0_76 = arith.constant 0 : index
    %c0_77 = arith.constant 0 : index
    %154 = vector.load %arg16[%c0_75, %c0_76, %c0_77] : memref<2x256x128xbf16, #tpu.memory_space<vmem>>, vector<1x256x128xbf16>
    %155 = vector.shape_cast %154 : vector<1x256x128xbf16> to vector<256x128xbf16>
    %156 = arith.truncf %153 : vector<8x256xf32> to vector<8x256xbf16>
    %cst_78 = arith.constant dense<0.000000e+00> : vector<8x128xf32>
    %157 = tpu.matmul %156, %155, %cst_78 {dimension_numbers = #tpu.dot_dimension_numbers<[1], [0], [0], [1], [0, 0, 1, 1], [], []>} : vector<8x256xbf16>, vector<256x128xbf16>, vector<8x128xf32> -> vector<8x128xf32>
    %158 = arith.addf %81, %157 : vector<8x128xf32>
    %c0_79 = arith.constant 0 : index
    %c0_80 = arith.constant 0 : index
    %c0_81 = arith.constant 0 : index
    %159 = vector.load %arg17[%c0_79, %c0_80, %c0_81] : memref<2x1x128xf32, #tpu.memory_space<vmem>>, vector<1x1x128xf32>
    %160 = vector.shape_cast %159 : vector<1x1x128xf32> to vector<1x128xf32>
    %161 = vector.broadcast %160 : vector<1x128xf32> to vector<8x128xf32>
    %162 = arith.addf %158, %161 : vector<8x128xf32>
    %c1 = arith.constant 1 : index
    %c0_82 = arith.constant 0 : index
    %c0_83 = arith.constant 0 : index
    %163 = vector.load %arg6[%c1, %c0_82, %c0_83] : memref<2x1x128xf32, #tpu.memory_space<vmem>>, vector<1x1x128xf32>
    %164 = vector.shape_cast %163 : vector<1x1x128xf32> to vector<1x128xf32>
    %c1_84 = arith.constant 1 : index
    %c0_85 = arith.constant 0 : index
    %c0_86 = arith.constant 0 : index
    %165 = vector.load %arg7[%c1_84, %c0_85, %c0_86] : memref<2x1x128xf32, #tpu.memory_space<vmem>>, vector<1x1x128xf32>
    %166 = vector.shape_cast %165 : vector<1x1x128xf32> to vector<1x128xf32>
    %cst_87 = arith.constant dense<0.000000e+00> : vector<8xf32>
    %167 = vector.multi_reduction <add>, %162, %cst_87 [1] : vector<8x128xf32> to vector<8xf32>
    %168 = vector.shape_cast %167 : vector<8xf32> to vector<8x1xf32>
    %cst_88 = arith.constant 1.280000e+02 : f32
    %169 = vector.broadcast %cst_88 : f32 to vector<8x1xf32>
    %170 = arith.divf %168, %169 : vector<8x1xf32>
    %171 = vector.broadcast %170 : vector<8x1xf32> to vector<8x128xf32>
    %172 = arith.subf %162, %171 : vector<8x128xf32>
    %173 = arith.mulf %172, %172 : vector<8x128xf32>
    %cst_89 = arith.constant dense<0.000000e+00> : vector<8xf32>
    %174 = vector.multi_reduction <add>, %173, %cst_89 [1] : vector<8x128xf32> to vector<8xf32>
    %175 = vector.shape_cast %174 : vector<8xf32> to vector<8x1xf32>
    %cst_90 = arith.constant 1.280000e+02 : f32
    %176 = vector.broadcast %cst_90 : f32 to vector<8x1xf32>
    %177 = arith.divf %175, %176 : vector<8x1xf32>
    %cst_91 = arith.constant 9.99999997E-7 : f32
    %178 = vector.broadcast %cst_91 : f32 to vector<8x1xf32>
    %179 = arith.addf %177, %178 : vector<8x1xf32>
    %180 = math.rsqrt %179 : vector<8x1xf32>
    %181 = vector.broadcast %180 : vector<8x1xf32> to vector<8x128xf32>
    %182 = arith.mulf %172, %181 : vector<8x128xf32>
    %183 = vector.broadcast %164 : vector<1x128xf32> to vector<8x128xf32>
    %184 = arith.mulf %182, %183 : vector<8x128xf32>
    %185 = vector.broadcast %166 : vector<1x128xf32> to vector<8x128xf32>
    %186 = arith.addf %184, %185 : vector<8x128xf32>
    %c1_92 = arith.constant 1 : index
    %c0_93 = arith.constant 0 : index
    %c0_94 = arith.constant 0 : index
    %187 = vector.load %arg8[%c1_92, %c0_93, %c0_94] : memref<2x128x384xbf16, #tpu.memory_space<vmem>>, vector<1x128x384xbf16>
    %188 = vector.shape_cast %187 : vector<1x128x384xbf16> to vector<128x384xbf16>
    %189 = arith.truncf %186 : vector<8x128xf32> to vector<8x128xbf16>
    %cst_95 = arith.constant dense<0.000000e+00> : vector<8x384xf32>
    %190 = tpu.matmul %189, %188, %cst_95 {dimension_numbers = #tpu.dot_dimension_numbers<[1], [0], [0], [1], [0, 0, 1, 1], [], []>} : vector<8x128xbf16>, vector<128x384xbf16>, vector<8x384xf32> -> vector<8x384xf32>
    %c1_96 = arith.constant 1 : index
    %c0_97 = arith.constant 0 : index
    %c0_98 = arith.constant 0 : index
    %191 = vector.load %arg9[%c1_96, %c0_97, %c0_98] : memref<2x1x384xf32, #tpu.memory_space<vmem>>, vector<1x1x384xf32>
    %192 = vector.shape_cast %191 : vector<1x1x384xf32> to vector<1x384xf32>
    %193 = vector.broadcast %192 : vector<1x384xf32> to vector<8x384xf32>
    %194 = arith.addf %190, %193 : vector<8x384xf32>
    %195 = vector.extract_strided_slice %194 {offsets = [0, 0], sizes = [8, 128], strides = [1, 1]} : vector<8x384xf32> to vector<8x128xf32>
    %196 = vector.extract_strided_slice %194 {offsets = [0, 128], sizes = [8, 128], strides = [1, 1]} : vector<8x384xf32> to vector<8x128xf32>
    %197 = arith.truncf %196 : vector<8x128xf32> to vector<8x128xbf16>
    %198 = vector.extract_strided_slice %194 {offsets = [0, 256], sizes = [8, 128], strides = [1, 1]} : vector<8x384xf32> to vector<8x128xf32>
    %199 = arith.truncf %198 : vector<8x128xf32> to vector<8x128xbf16>
    %200 = vector.shape_cast %195 : vector<8x128xf32> to vector<1x8x128xf32>
    %201 = vector.broadcast %200 : vector<1x8x128xf32> to vector<4x8x128xf32>
    %202 = vector.broadcast %0 : vector<4x1x128xf32> to vector<4x8x128xf32>
    %203 = arith.mulf %201, %202 : vector<4x8x128xf32>
    %204 = vector.shape_cast %203 : vector<4x8x128xf32> to vector<32x128xf32>
    %205 = arith.truncf %204 : vector<32x128xf32> to vector<32x128xbf16>
    %cst_99 = arith.constant dense<0.000000e+00> : vector<32x8xf32>
    %206 = tpu.matmul %205, %197, %cst_99 {dimension_numbers = #tpu.dot_dimension_numbers<[1], [1], [0], [0], [0, 0, 1, 0], [], []>} : vector<32x128xbf16>, vector<8x128xbf16>, vector<32x8xf32> -> vector<32x8xf32>
    %cst_100 = arith.constant 0.176776692 : f32
    %207 = vector.broadcast %cst_100 : f32 to vector<32x8xf32>
    %208 = arith.mulf %206, %207 : vector<32x8xf32>
    %209 = vector.broadcast %1 : vector<1x8xf32> to vector<32x8xf32>
    %210 = arith.addf %208, %209 : vector<32x8xf32>
    %cst_101 = arith.constant dense<0xFF800000> : vector<32xf32>
    %211 = vector.multi_reduction <maximumf>, %210, %cst_101 [1] : vector<32x8xf32> to vector<32xf32>
    %212 = vector.shape_cast %211 : vector<32xf32> to vector<32x1xf32>
    %213 = vector.broadcast %212 : vector<32x1xf32> to vector<32x8xf32>
    %214 = arith.subf %210, %213 : vector<32x8xf32>
    %215 = math.exp %214 : vector<32x8xf32>
    %cst_102 = arith.constant dense<0.000000e+00> : vector<32xf32>
    %216 = vector.multi_reduction <add>, %215, %cst_102 [1] : vector<32x8xf32> to vector<32xf32>
    %217 = vector.shape_cast %216 : vector<32xf32> to vector<32x1xf32>
    %218 = tpu.reciprocal %217 {approx = true} : vector<32x1xf32> -> vector<32x1xf32>
    %219 = vector.broadcast %218 : vector<32x1xf32> to vector<32x8xf32>
    %220 = arith.mulf %215, %219 : vector<32x8xf32>
    %221 = arith.truncf %220 : vector<32x8xf32> to vector<32x8xbf16>
    %cst_103 = arith.constant dense<0.000000e+00> : vector<32x128xf32>
    %222 = tpu.matmul %221, %199, %cst_103 {dimension_numbers = #tpu.dot_dimension_numbers<[1], [0], [0], [1], [0, 0, 1, 1], [], []>} : vector<32x8xbf16>, vector<8x128xbf16>, vector<32x128xf32> -> vector<32x128xf32>
    %223 = vector.shape_cast %222 : vector<32x128xf32> to vector<4x8x128xf32>
    %224 = vector.broadcast %0 : vector<4x1x128xf32> to vector<4x8x128xf32>
    %225 = arith.mulf %223, %224 : vector<4x8x128xf32>
    %cst_104 = arith.constant dense<0.000000e+00> : vector<8x128xf32>
    %226 = vector.multi_reduction <add>, %225, %cst_104 [0] : vector<4x8x128xf32> to vector<8x128xf32>
    %c1_105 = arith.constant 1 : index
    %c0_106 = arith.constant 0 : index
    %c0_107 = arith.constant 0 : index
    %227 = vector.load %arg10[%c1_105, %c0_106, %c0_107] : memref<2x128x128xbf16, #tpu.memory_space<vmem>>, vector<1x128x128xbf16>
    %228 = vector.shape_cast %227 : vector<1x128x128xbf16> to vector<128x128xbf16>
    %229 = arith.truncf %226 : vector<8x128xf32> to vector<8x128xbf16>
    %cst_108 = arith.constant dense<0.000000e+00> : vector<8x128xf32>
    %230 = tpu.matmul %229, %228, %cst_108 {dimension_numbers = #tpu.dot_dimension_numbers<[1], [0], [0], [1], [0, 0, 1, 1], [], []>} : vector<8x128xbf16>, vector<128x128xbf16>, vector<8x128xf32> -> vector<8x128xf32>
    %231 = arith.addf %162, %230 : vector<8x128xf32>
    %c1_109 = arith.constant 1 : index
    %c0_110 = arith.constant 0 : index
    %c0_111 = arith.constant 0 : index
    %232 = vector.load %arg11[%c1_109, %c0_110, %c0_111] : memref<2x1x128xf32, #tpu.memory_space<vmem>>, vector<1x1x128xf32>
    %233 = vector.shape_cast %232 : vector<1x1x128xf32> to vector<1x128xf32>
    %234 = vector.broadcast %233 : vector<1x128xf32> to vector<8x128xf32>
    %235 = arith.addf %231, %234 : vector<8x128xf32>
    %c1_112 = arith.constant 1 : index
    %c0_113 = arith.constant 0 : index
    %c0_114 = arith.constant 0 : index
    %236 = vector.load %arg12[%c1_112, %c0_113, %c0_114] : memref<2x1x128xf32, #tpu.memory_space<vmem>>, vector<1x1x128xf32>
    %237 = vector.shape_cast %236 : vector<1x1x128xf32> to vector<1x128xf32>
    %c1_115 = arith.constant 1 : index
    %c0_116 = arith.constant 0 : index
    %c0_117 = arith.constant 0 : index
    %238 = vector.load %arg13[%c1_115, %c0_116, %c0_117] : memref<2x1x128xf32, #tpu.memory_space<vmem>>, vector<1x1x128xf32>
    %239 = vector.shape_cast %238 : vector<1x1x128xf32> to vector<1x128xf32>
    %cst_118 = arith.constant dense<0.000000e+00> : vector<8xf32>
    %240 = vector.multi_reduction <add>, %235, %cst_118 [1] : vector<8x128xf32> to vector<8xf32>
    %241 = vector.shape_cast %240 : vector<8xf32> to vector<8x1xf32>
    %cst_119 = arith.constant 1.280000e+02 : f32
    %242 = vector.broadcast %cst_119 : f32 to vector<8x1xf32>
    %243 = arith.divf %241, %242 : vector<8x1xf32>
    %244 = vector.broadcast %243 : vector<8x1xf32> to vector<8x128xf32>
    %245 = arith.subf %235, %244 : vector<8x128xf32>
    %246 = arith.mulf %245, %245 : vector<8x128xf32>
    %cst_120 = arith.constant dense<0.000000e+00> : vector<8xf32>
    %247 = vector.multi_reduction <add>, %246, %cst_120 [1] : vector<8x128xf32> to vector<8xf32>
    %248 = vector.shape_cast %247 : vector<8xf32> to vector<8x1xf32>
    %cst_121 = arith.constant 1.280000e+02 : f32
    %249 = vector.broadcast %cst_121 : f32 to vector<8x1xf32>
    %250 = arith.divf %248, %249 : vector<8x1xf32>
    %cst_122 = arith.constant 9.99999997E-7 : f32
    %251 = vector.broadcast %cst_122 : f32 to vector<8x1xf32>
    %252 = arith.addf %250, %251 : vector<8x1xf32>
    %253 = math.rsqrt %252 : vector<8x1xf32>
    %254 = vector.broadcast %253 : vector<8x1xf32> to vector<8x128xf32>
    %255 = arith.mulf %245, %254 : vector<8x128xf32>
    %256 = vector.broadcast %237 : vector<1x128xf32> to vector<8x128xf32>
    %257 = arith.mulf %255, %256 : vector<8x128xf32>
    %258 = vector.broadcast %239 : vector<1x128xf32> to vector<8x128xf32>
    %259 = arith.addf %257, %258 : vector<8x128xf32>
    %c1_123 = arith.constant 1 : index
    %c0_124 = arith.constant 0 : index
    %c0_125 = arith.constant 0 : index
    %260 = vector.load %arg14[%c1_123, %c0_124, %c0_125] : memref<2x128x256xbf16, #tpu.memory_space<vmem>>, vector<1x128x256xbf16>
    %261 = vector.shape_cast %260 : vector<1x128x256xbf16> to vector<128x256xbf16>
    %262 = arith.truncf %259 : vector<8x128xf32> to vector<8x128xbf16>
    %cst_126 = arith.constant dense<0.000000e+00> : vector<8x256xf32>
    %263 = tpu.matmul %262, %261, %cst_126 {dimension_numbers = #tpu.dot_dimension_numbers<[1], [0], [0], [1], [0, 0, 1, 1], [], []>} : vector<8x128xbf16>, vector<128x256xbf16>, vector<8x256xf32> -> vector<8x256xf32>
    %c1_127 = arith.constant 1 : index
    %c0_128 = arith.constant 0 : index
    %c0_129 = arith.constant 0 : index
    %264 = vector.load %arg15[%c1_127, %c0_128, %c0_129] : memref<2x1x256xf32, #tpu.memory_space<vmem>>, vector<1x1x256xf32>
    %265 = vector.shape_cast %264 : vector<1x1x256xf32> to vector<1x256xf32>
    %266 = vector.broadcast %265 : vector<1x256xf32> to vector<8x256xf32>
    %267 = arith.addf %263, %266 : vector<8x256xf32>
    %cst_130 = arith.constant 0.707106769 : f32
    %268 = vector.broadcast %cst_130 : f32 to vector<8x256xf32>
    %269 = arith.mulf %267, %268 : vector<8x256xf32>
    %270 = math.absf %269 : vector<8x256xf32>
    %cst_131 = arith.constant 0.327591091 : f32
    %271 = vector.broadcast %cst_131 : f32 to vector<8x256xf32>
    %272 = arith.mulf %271, %270 : vector<8x256xf32>
    %cst_132 = arith.constant 1.000000e+00 : f32
    %273 = vector.broadcast %cst_132 : f32 to vector<8x256xf32>
    %274 = arith.addf %273, %272 : vector<8x256xf32>
    %cst_133 = arith.constant 1.000000e+00 : f32
    %275 = vector.broadcast %cst_133 : f32 to vector<8x256xf32>
    %276 = arith.divf %275, %274 : vector<8x256xf32>
    %cst_134 = arith.constant 1.06140542 : f32
    %277 = vector.broadcast %cst_134 : f32 to vector<8x256xf32>
    %278 = arith.mulf %276, %277 : vector<8x256xf32>
    %cst_135 = arith.constant -1.45315206 : f32
    %279 = vector.broadcast %cst_135 : f32 to vector<8x256xf32>
    %280 = arith.addf %279, %278 : vector<8x256xf32>
    %281 = arith.mulf %276, %280 : vector<8x256xf32>
    %cst_136 = arith.constant 1.42141378 : f32
    %282 = vector.broadcast %cst_136 : f32 to vector<8x256xf32>
    %283 = arith.addf %282, %281 : vector<8x256xf32>
    %284 = arith.mulf %276, %283 : vector<8x256xf32>
    %cst_137 = arith.constant -0.284496725 : f32
    %285 = vector.broadcast %cst_137 : f32 to vector<8x256xf32>
    %286 = arith.addf %285, %284 : vector<8x256xf32>
    %287 = arith.mulf %276, %286 : vector<8x256xf32>
    %cst_138 = arith.constant 0.254829586 : f32
    %288 = vector.broadcast %cst_138 : f32 to vector<8x256xf32>
    %289 = arith.addf %288, %287 : vector<8x256xf32>
    %290 = arith.mulf %276, %289 : vector<8x256xf32>
    %cst_139 = arith.constant 0.000000e+00 : f32
    %291 = vector.broadcast %cst_139 : f32 to vector<8x256xf32>
    %292 = arith.subf %291, %270 : vector<8x256xf32>
    %293 = arith.mulf %292, %270 : vector<8x256xf32>
    %294 = math.exp %293 : vector<8x256xf32>
    %295 = arith.mulf %290, %294 : vector<8x256xf32>
    %cst_140 = arith.constant 1.000000e+00 : f32
    %296 = vector.broadcast %cst_140 : f32 to vector<8x256xf32>
    %297 = arith.subf %296, %295 : vector<8x256xf32>
    %cst_141 = arith.constant 0.000000e+00 : f32
    %298 = vector.broadcast %cst_141 : f32 to vector<8x256xf32>
    %299 = arith.cmpf oge, %269, %298 : vector<8x256xf32>
    %cst_142 = arith.constant 0.000000e+00 : f32
    %300 = vector.broadcast %cst_142 : f32 to vector<8x256xf32>
    %301 = arith.subf %300, %297 : vector<8x256xf32>
    %302 = arith.select %299, %297, %301 : vector<8x256xi1>, vector<8x256xf32>
    %cst_143 = arith.constant 5.000000e-01 : f32
    %303 = vector.broadcast %cst_143 : f32 to vector<8x256xf32>
    %304 = arith.mulf %303, %267 : vector<8x256xf32>
    %cst_144 = arith.constant 1.000000e+00 : f32
    %305 = vector.broadcast %cst_144 : f32 to vector<8x256xf32>
    %306 = arith.addf %305, %302 : vector<8x256xf32>
    %307 = arith.mulf %304, %306 : vector<8x256xf32>
    %c1_145 = arith.constant 1 : index
    %c0_146 = arith.constant 0 : index
    %c0_147 = arith.constant 0 : index
    %308 = vector.load %arg16[%c1_145, %c0_146, %c0_147] : memref<2x256x128xbf16, #tpu.memory_space<vmem>>, vector<1x256x128xbf16>
    %309 = vector.shape_cast %308 : vector<1x256x128xbf16> to vector<256x128xbf16>
    %310 = arith.truncf %307 : vector<8x256xf32> to vector<8x256xbf16>
    %cst_148 = arith.constant dense<0.000000e+00> : vector<8x128xf32>
    %311 = tpu.matmul %310, %309, %cst_148 {dimension_numbers = #tpu.dot_dimension_numbers<[1], [0], [0], [1], [0, 0, 1, 1], [], []>} : vector<8x256xbf16>, vector<256x128xbf16>, vector<8x128xf32> -> vector<8x128xf32>
    %312 = arith.addf %235, %311 : vector<8x128xf32>
    %c1_149 = arith.constant 1 : index
    %c0_150 = arith.constant 0 : index
    %c0_151 = arith.constant 0 : index
    %313 = vector.load %arg17[%c1_149, %c0_150, %c0_151] : memref<2x1x128xf32, #tpu.memory_space<vmem>>, vector<1x1x128xf32>
    %314 = vector.shape_cast %313 : vector<1x1x128xf32> to vector<1x128xf32>
    %315 = vector.broadcast %314 : vector<1x128xf32> to vector<8x128xf32>
    %316 = arith.addf %312, %315 : vector<8x128xf32>
    %317 = vector.extract_strided_slice %316 {offsets = [0, 0], sizes = [1, 128], strides = [1, 1]} : vector<8x128xf32> to vector<1x128xf32>
    %c0_152 = arith.constant 0 : index
    %c0_153 = arith.constant 0 : index
    %318 = vector.load %arg18[%c0_152, %c0_153] : memref<1x128xf32, #tpu.memory_space<vmem>>, vector<1x128xf32>
    %c0_154 = arith.constant 0 : index
    %c0_155 = arith.constant 0 : index
    %319 = vector.load %arg19[%c0_154, %c0_155] : memref<1x128xf32, #tpu.memory_space<vmem>>, vector<1x128xf32>
    %cst_156 = arith.constant dense<0.000000e+00> : vector<1xf32>
    %320 = vector.multi_reduction <add>, %317, %cst_156 [1] : vector<1x128xf32> to vector<1xf32>
    %321 = vector.shape_cast %320 : vector<1xf32> to vector<1x1xf32>
    %cst_157 = arith.constant 1.280000e+02 : f32
    %322 = vector.broadcast %cst_157 : f32 to vector<1x1xf32>
    %323 = arith.divf %321, %322 : vector<1x1xf32>
    %324 = vector.broadcast %323 : vector<1x1xf32> to vector<1x128xf32>
    %325 = arith.subf %317, %324 : vector<1x128xf32>
    %326 = arith.mulf %325, %325 : vector<1x128xf32>
    %cst_158 = arith.constant dense<0.000000e+00> : vector<1xf32>
    %327 = vector.multi_reduction <add>, %326, %cst_158 [1] : vector<1x128xf32> to vector<1xf32>
    %328 = vector.shape_cast %327 : vector<1xf32> to vector<1x1xf32>
    %cst_159 = arith.constant 1.280000e+02 : f32
    %329 = vector.broadcast %cst_159 : f32 to vector<1x1xf32>
    %330 = arith.divf %328, %329 : vector<1x1xf32>
    %cst_160 = arith.constant 9.99999997E-7 : f32
    %331 = vector.broadcast %cst_160 : f32 to vector<1x1xf32>
    %332 = arith.addf %330, %331 : vector<1x1xf32>
    %333 = math.rsqrt %332 : vector<1x1xf32>
    %334 = vector.broadcast %333 : vector<1x1xf32> to vector<1x128xf32>
    %335 = arith.mulf %325, %334 : vector<1x128xf32>
    %336 = arith.mulf %335, %318 : vector<1x128xf32>
    %337 = arith.addf %336, %319 : vector<1x128xf32>
    %c0_161 = arith.constant 0 : index
    %c0_162 = arith.constant 0 : index
    %338 = vector.load %arg20[%c0_161, %c0_162] : memref<128x128xbf16, #tpu.memory_space<vmem>>, vector<128x128xbf16>
    %339 = arith.truncf %337 : vector<1x128xf32> to vector<1x128xbf16>
    %cst_163 = arith.constant dense<0.000000e+00> : vector<1x128xf32>
    %340 = tpu.matmul %339, %338, %cst_163 {dimension_numbers = #tpu.dot_dimension_numbers<[1], [0], [0], [1], [0, 0, 1, 1], [], []>} : vector<1x128xbf16>, vector<128x128xbf16>, vector<1x128xf32> -> vector<1x128xf32>
    %c0_164 = arith.constant 0 : index
    %c0_165 = arith.constant 0 : index
    %341 = vector.load %arg21[%c0_164, %c0_165] : memref<1x128xf32, #tpu.memory_space<vmem>>, vector<1x128xf32>
    %342 = arith.addf %340, %341 : vector<1x128xf32>
    %c0_166 = arith.constant 0 : index
    %c0_167 = arith.constant 0 : index
    %c0_168 = arith.constant 0 : index
    %343 = vector.load %arg22[%c0_166, %c0_167, %c0_168] : memref<1x1x128xf32, #tpu.memory_space<vmem>>, vector<1x1x128xf32>
    %344 = vector.shape_cast %343 : vector<1x1x128xf32> to vector<1x128xf32>
    %345 = vector.shape_cast %342 : vector<1x128xf32> to vector<1x1x128xf32>
    tpu.vector_store %arg22[%c0_166, %c0_167, %c0_168], %345 {strides = array<i32>} : memref<1x1x128xf32, #tpu.memory_space<vmem>>, vector<1x1x128xf32>,
    return
  }
  func.func @transform_0(%arg0: i32) -> (i32, i32, i32) {
    %c0_i32 = arith.constant 0 : i32
    %c0_i32_0 = arith.constant 0 : i32
    %c0_i32_1 = arith.constant 0 : i32
    return %arg0, %c0_i32, %c0_i32_0 : i32, i32, i32
  }
  func.func @transform_1(%arg0: i32) -> (i32, i32) {
    %c0_i32 = arith.constant 0 : i32
    %c0_i32_0 = arith.constant 0 : i32
    %c0_i32_1 = arith.constant 0 : i32
    return %c0_i32, %c0_i32_0 : i32, i32
  }
  func.func @transform_2(%arg0: i32) -> (i32, i32) {
    %c0_i32 = arith.constant 0 : i32
    %c0_i32_0 = arith.constant 0 : i32
    %c0_i32_1 = arith.constant 0 : i32
    return %c0_i32, %c0_i32_0 : i32, i32
  }
  func.func @transform_3(%arg0: i32) -> (i32, i32, i32) {
    %c0_i32 = arith.constant 0 : i32
    %c0_i32_0 = arith.constant 0 : i32
    %c0_i32_1 = arith.constant 0 : i32
    %c0_i32_2 = arith.constant 0 : i32
    return %c0_i32, %c0_i32_0, %c0_i32_1 : i32, i32, i32
  }
  func.func @transform_4(%arg0: i32) -> (i32, i32) {
    %c0_i32 = arith.constant 0 : i32
    %c0_i32_0 = arith.constant 0 : i32
    %c0_i32_1 = arith.constant 0 : i32
    return %c0_i32, %c0_i32_0 : i32, i32
  }
  func.func @transform_5(%arg0: i32) -> (i32, i32, i32) {
    %c0_i32 = arith.constant 0 : i32
    %c0_i32_0 = arith.constant 0 : i32
    %c0_i32_1 = arith.constant 0 : i32
    %c0_i32_2 = arith.constant 0 : i32
    return %c0_i32, %c0_i32_0, %c0_i32_1 : i32, i32, i32
  }
  func.func @transform_6(%arg0: i32) -> (i32, i32, i32) {
    %c0_i32 = arith.constant 0 : i32
    %c0_i32_0 = arith.constant 0 : i32
    %c0_i32_1 = arith.constant 0 : i32
    %c0_i32_2 = arith.constant 0 : i32
    return %c0_i32, %c0_i32_0, %c0_i32_1 : i32, i32, i32
  }
  func.func @transform_7(%arg0: i32) -> (i32, i32, i32) {
    %c0_i32 = arith.constant 0 : i32
    %c0_i32_0 = arith.constant 0 : i32
    %c0_i32_1 = arith.constant 0 : i32
    %c0_i32_2 = arith.constant 0 : i32
    return %c0_i32, %c0_i32_0, %c0_i32_1 : i32, i32, i32
  }
  func.func @transform_8(%arg0: i32) -> (i32, i32, i32) {
    %c0_i32 = arith.constant 0 : i32
    %c0_i32_0 = arith.constant 0 : i32
    %c0_i32_1 = arith.constant 0 : i32
    %c0_i32_2 = arith.constant 0 : i32
    return %c0_i32, %c0_i32_0, %c0_i32_1 : i32, i32, i32
  }
  func.func @transform_9(%arg0: i32) -> (i32, i32, i32) {
    %c0_i32 = arith.constant 0 : i32
    %c0_i32_0 = arith.constant 0 : i32
    %c0_i32_1 = arith.constant 0 : i32
    %c0_i32_2 = arith.constant 0 : i32
    return %c0_i32, %c0_i32_0, %c0_i32_1 : i32, i32, i32
  }
  func.func @transform_10(%arg0: i32) -> (i32, i32, i32) {
    %c0_i32 = arith.constant 0 : i32
    %c0_i32_0 = arith.constant 0 : i32
    %c0_i32_1 = arith.constant 0 : i32
    %c0_i32_2 = arith.constant 0 : i32
    return %c0_i32, %c0_i32_0, %c0_i32_1 : i32, i32, i32
  }
  func.func @transform_11(%arg0: i32) -> (i32, i32, i32) {
    %c0_i32 = arith.constant 0 : i32
    %c0_i32_0 = arith.constant 0 : i32
    %c0_i32_1 = arith.constant 0 : i32
    %c0_i32_2 = arith.constant 0 : i32
    return %c0_i32, %c0_i32_0, %c0_i32_1 : i32, i32, i32
  }
  func.func @transform_12(%arg0: i32) -> (i32, i32, i32) {
    %c0_i32 = arith.constant 0 : i32
    %c0_i32_0 = arith.constant 0 : i32
    %c0_i32_1 = arith.constant 0 : i32
    %c0_i32_2 = arith.constant 0 : i32
    return %c0_i32, %c0_i32_0, %c0_i32_1 : i32, i32, i32
  }
  func.func @transform_13(%arg0: i32) -> (i32, i32, i32) {
    %c0_i32 = arith.constant 0 : i32
    %c0_i32_0 = arith.constant 0 : i32
    %c0_i32_1 = arith.constant 0 : i32
    %c0_i32_2 = arith.constant 0 : i32
    return %c0_i32, %c0_i32_0, %c0_i32_1 : i32, i32, i32
  }
  func.func @transform_14(%arg0: i32) -> (i32, i32, i32) {
    %c0_i32 = arith.constant 0 : i32
    %c0_i32_0 = arith.constant 0 : i32
    %c0_i32_1 = arith.constant 0 : i32
    %c0_i32_2 = arith.constant 0 : i32
    return %c0_i32, %c0_i32_0, %c0_i32_1 : i32, i32, i32
  }
  func.func @transform_15(%arg0: i32) -> (i32, i32, i32) {
    %c0_i32 = arith.constant 0 : i32
    %c0_i32_0 = arith.constant 0 : i32
    %c0_i32_1 = arith.constant 0 : i32
    %c0_i32_2 = arith.constant 0 : i32
    return %c0_i32, %c0_i32_0, %c0_i32_1 : i32, i32, i32
  }
  func.func @transform_16(%arg0: i32) -> (i32, i32, i32) {
    %c0_i32 = arith.constant 0 : i32
    %c0_i32_0 = arith.constant 0 : i32
    %c0_i32_1 = arith.constant 0 : i32
    %c0_i32_2 = arith.constant 0 : i32
    return %c0_i32, %c0_i32_0, %c0_i32_1 : i32, i32, i32
  }
  func.func @transform_17(%arg0: i32) -> (i32, i32) {
    %c0_i32 = arith.constant 0 : i32
    %c0_i32_0 = arith.constant 0 : i32
    %c0_i32_1 = arith.constant 0 : i32
    return %c0_i32, %c0_i32_0 : i32, i32
  }
  func.func @transform_18(%arg0: i32) -> (i32, i32) {
    %c0_i32 = arith.constant 0 : i32
    %c0_i32_0 = arith.constant 0 : i32
    %c0_i32_1 = arith.constant 0 : i32
    return %c0_i32, %c0_i32_0 : i32, i32
  }
  func.func @transform_19(%arg0: i32) -> (i32, i32) {
    %c0_i32 = arith.constant 0 : i32
    %c0_i32_0 = arith.constant 0 : i32
    %c0_i32_1 = arith.constant 0 : i32
    return %c0_i32, %c0_i32_0 : i32, i32
  }
  func.func @transform_20(%arg0: i32) -> (i32, i32) {
    %c0_i32 = arith.constant 0 : i32
    %c0_i32_0 = arith.constant 0 : i32
    %c0_i32_1 = arith.constant 0 : i32
    return %c0_i32, %c0_i32_0 : i32, i32
  }
  func.func @transform_21(%arg0: i32) -> (i32, i32, i32) {
    %c0_i32 = arith.constant 0 : i32
    %c0_i32_0 = arith.constant 0 : i32
    %c0_i32_1 = arith.constant 0 : i32
    return %arg0, %c0_i32, %c0_i32_0 : i32, i32, i32
  }
}

</mosaic_0001>

<bundles_post_ra>
// kernel: vit_forward.1
= control target key start
LH: loop header
LB: loop body
LE: loop exit
PB: predicated region body
PF: predicated region fallthrough
CT: control target
= control target key end

     0   :  { %s5474_s0 = inlined_call_operand.vmem [shape: f32[2,8,768], index: 0, kind: input, shape index: {}]   ;;  %s5475_s1 = inlined_call_operand.vmem [shape: bf16[768,128], index: 1, kind: input, shape index: {}]   ;;  %s5476_s2 = inlined_call_operand.vmem [shape: f32[8,128], index: 2, kind: input, shape index: {}]   ;;  %s5477_s3 = inlined_call_operand.vmem [shape: f32[4,1,128], index: 3, kind: input, shape index: {}]   ;;  %s5478_s4 = inlined_call_operand.vmem [shape: f32[1,8], index: 4, kind: input, shape index: {}]   ;;  %s5479_s5 = inlined_call_operand.vmem [shape: f32[2,1,128], index: 5, kind: input, shape index: {}]   ;;  %s5480_s6 = inlined_call_operand.vmem [shape: f32[2,1,128], index: 6, kind: input, shape index: {}]   ;;  %s5481_s7 = inlined_call_operand.vmem [shape: bf16[2,128,384], index: 7, kind: input, shape index: {}]   ;;  %s5482_s8 = inlined_call_operand.vmem [shape: f32[2,1,384], index: 8, kind: input, shape index: {}]   ;;  %s5483_s9 = inlined_call_operand.vmem [shape: bf16[2,128,128], index: 9, kind: input, shape index: {}]   ;;  %s5484_s10 = inlined_call_operand.vmem [shape: f32[2,1,128], index: 10, kind: input, shape index: {}]   ;;  %s5485_s11 = inlined_call_operand.vmem [shape: f32[2,1,128], index: 11, kind: input, shape index: {}]   ;;  %s5486_s12 = inlined_call_operand.vmem [shape: f32[2,1,128], index: 12, kind: input, shape index: {}]   ;;  %s5487_s13 = inlined_call_operand.vmem [shape: bf16[2,128,256], index: 13, kind: input, shape index: {}]   ;;  %s5488_s14 = inlined_call_operand.vmem [shape: f32[2,1,256], index: 14, kind: input, shape index: {}]   ;;  %s5489_s15 = inlined_call_operand.vmem [shape: bf16[2,256,128], index: 15, kind: input, shape index: {}]   ;;  %s5490_s16 = inlined_call_operand.vmem [shape: f32[2,1,128], index: 16, kind: input, shape index: {}]   ;;  %s5491_s17 = inlined_call_operand.vmem [shape: f32[1,128], index: 17, kind: input, shape index: {}]   ;;  %s5492_s18 = inlined_call_operand.vmem [shape: f32[1,128], index: 18, kind: input, shape index: {}]   ;;  %s5493_s19 = inlined_call_operand.vmem [shape: bf16[128,128], index: 19, kind: input, shape index: {}]   ;;  %s5494_s20 = inlined_call_operand.vmem [shape: f32[1,128], index: 20, kind: input, shape index: {}]   ;;  %s5495_s21 = inlined_call_operand.hbm [shape: f32[2,1,128], index: 21, kind: output, shape index: {}]  }
   0x1   :  { %5508 = sst [smem:[#allocation12_spill]] %s5474_s0 }
   0x2   :  { %5509 = sst [smem:[#allocation13_spill]] %s5475_s1 }
   0x3   :  { %5510 = sst [smem:[#allocation14_spill]] %s5476_s2 }
   0x4   :  { %5511 = sst [smem:[#allocation15_spill]] %s5477_s3 }
   0x5   :  { %5512 = sst [smem:[#allocation16_spill]] %s5478_s4 }
   0x6   :  { %5513 = sst [smem:[#allocation17_spill]] %s5479_s5 }
   0x7   :  { %5514 = sst [smem:[#allocation18_spill]] %s5480_s6 }
   0x8   :  { %5515 = sst [smem:[#allocation19_spill]] %s5481_s7 }
   0x9   :  { %5516 = sst [smem:[#allocation20_spill]] %s5494_s20 }
   0xa   :  { %26 = vsyncpa [#allocation3], 0 }
   0xb   :  { %28 = vsyncpa [#allocation3 + $0x1], 0  ;;  %s4356_s2 = smov 0   ;;  %s4358_s25 = smov 0  }
   0xc   :  { %s4360_s26 = smov 0   ;;  %s4362_s27 = smov 0  }
   0xd LB: > { %5517 = sst [smem:[#allocation5_spill]] %s4231_s2  ;;  %s4377_s3 = sadd.s32 4294967295, %s4243_s27   ;;  %s4243_s27 = sphi %s4362_s27, %s5539_s27   ;;  %s4239_s26 = sphi %s4360_s26, %s5541_s26   ;;  %s4235_s25 = sphi %s4358_s25, %s5543_s25   ;;  %s4231_s2 = sphi %s4356_s2, %s5542_s2  }
   0xe   : > { %5518 = sst [smem:[#allocation6_spill]] %s4239_s26  ;;  %s3024_s28 = sadd.s32 4294967294, %s4243_s27  }
   0xf   : > { %5519 = sst [smem:[#allocation7_spill]] %s4243_s27  ;;  %s4381_s29 = sadd.s32 1, %s4243_s27  }
  0x10   : > { %5520 = sst [smem:[#allocation8_spill]] %s4381_s29  ;;  %s487_s0 = sadd.s32 1, %s4239_s26 }
  0x11   : > { %s484_s4 = ssub.s32 %s4243_s27, %s4381_s29  ;;  %p497_p0 = scmp.ne.s32.totalorder %s4239_s26, %s4235_s25 }
  0x12   : > { %p485_p1 = scmp.eq.s32.totalorder %s484_s4, 0  ;;  %p498_p2 = scmp.eq.s32.totalorder %s4377_s3, 1 }
  0x13   : > { %p503_p3 = scmp.ne.s32.totalorder %s4235_s25, %s4231_s2  ;;  %p504_p4 = scmp.eq.s32.totalorder %s3024_s28, 1 }
  0x14   : > { %s4392_s30 = scalar_select %p485_p1, %s4239_s26, %s487_s0  }
  0x15   : > { %p4394_p5 = por %p498_p2, %p497_p0  ;;  %p4398_p6 = por %p504_p4, %p503_p3 }
  0x16   : > { %5521 = sst [smem:[#allocation9_spill]] %s4392_s30  ;;  %p3027_p7 = scmp.ge.s32.totalorder %s4243_s27, 1 }
  0x17   : > { %s5522_s5 = scalar_select %p4394_p5, 1, 0 }
  0x18   : > { %s5524_s22 = scalar_select %p4398_p6, 1, 0 }
  0x19   : > { %5523 = sst [smem:[#allocation10_spill]] %s5522_s5  ;;  %p590_p8 = scmp.lt.s32.totalorder %s4243_s27, 3 }
  0x1a   : > { %5525 = sst [smem:[#allocation11_spill]] %s5524_s22 }
  0x1b   : > { %p591_p9 = pnand %p3027_p7, %p590_p8 }
  0x1c   : > { %s5526_s24 = sld [smem:[#allocation13_spill]] (!%p591_p9)  ;;  %p649_p10 = scmp.lt.s32.totalorder (!%p591_p9), %s4377_s3, 1 }
  0x1d   : > { %594 = sbr.rel (%p591_p9) target bundleno = 4030 (0xfbe), region = 104  ;;  %s5527_s0 = sld [smem:[#allocation12_spill]] (!%p591_p9) }
  0x1e   : > { %s5528_s20 = sld [smem:[#allocation14_spill]] (!%p591_p9)  ;;  %s2965_s27 = scalar_lea.hbm (!%p591_p9), %s5495_s21, %s4377_s3 }
  0x1f   : > { %s5529_s7 = sld [smem:[#allocation19_spill]] (!%p591_p9) }
  0x20   : > { %s5530_s23 = sld [smem:[#allocation17_spill]] (!%p591_p9) }
  0x21   : > { %s5531_s6 = sld [smem:[#allocation18_spill]] (!%p591_p9) }
  0x22   : > { %v3882_v0 = vld [vmem:[%s5526_s24 + $0x38] sm:$0xff]  ;;  %v3881_v2 = vld [vmem:[%s5526_s24 + $0x30] sm:$0xff]  ;;  %v3880_v8 = vld [vmem:[%s5526_s24 + $0x28] sm:$0xff]  ;;  %s650_s29 = scalar_select %p649_p10, %s4377_s3, 1  ;;  %vm1483_vm4 = vcmask 1043456   ;;  %vm1430_vm5 = vcmask 64512  }
  0x23   : > { %v3890_v1 = vld [vmem:[%s5526_s24 + $0x78] sm:$0xff]  ;;  %1057 = vmatpush.bf16.msra.mxu0 %v3882_v0  ;;  %v3889_v3 = vld [vmem:[%s5526_s24 + $0x70] sm:$0xff]  ;;  %v3888_v9 = vld [vmem:[%s5526_s24 + $0x68] sm:$0xff]  ;;  %s5532_s5 = sld [smem:[#allocation15_spill]] }
  0x24   : > { %1070 = vmatpush.bf16.msra.mxu1 %v3890_v1  ;;  %v3898_v4 = vld [vmem:[%s5526_s24 + $0xb8] sm:$0xff]  ;;  %v3897_v6 = vld [vmem:[%s5526_s24 + $0xb0] sm:$0xff]  ;;  %v3896_v10 = vld [vmem:[%s5526_s24 + $0xa8] sm:$0xff]  ;;  %s4059_s26 = smul.u32 48, %s650_s29  ;;  %s5533_s28 = sld [smem:[#allocation16_spill]] }
  0x25   : > { %v3906_v5 = vld [vmem:[%s5526_s24 + $0xf8] sm:$0xff]  ;;  %1083 = vmatpush.bf16.msra.mxu2 %v3898_v4  ;;  %v3905_v7 = vld [vmem:[%s5526_s24 + $0xf0] sm:$0xff]  ;;  %v3904_v11 = vld [vmem:[%s5526_s24 + $0xe8] sm:$0xff] }
  0x26   : > { %1096 = vmatpush.bf16.msra.mxu3 %v3906_v5  ;;  %v3879_v12 = vld [vmem:[%s5526_s24 + $0x20] sm:$0xff]  ;;  %v3878_v16 = vld [vmem:[%s5526_s24 + $0x18] sm:$0xff]  ;;  %v3877_v19 = vld [vmem:[%s5526_s24 + $0x10] sm:$0xff]  ;;  %s4487_s29 = scalar_lea.vmem %s5527_s0, %s4059_s26 }
  0x27   : > { %1058 = vmatpush.bf16.msra.mxu0 %v3881_v2  ;;  %v3887_v13 = vld [vmem:[%s5526_s24 + $0x60] sm:$0xff]  ;;  %v3886_v17 = vld [vmem:[%s5526_s24 + $0x58] sm:$0xff]  ;;  %v3885_v20 = vld [vmem:[%s5526_s24 + $0x50] sm:$0xff] }
  0x28   : > { %1071 = vmatpush.bf16.msra.mxu1 %v3889_v3  ;;  %v3895_v14 = vld [vmem:[%s5526_s24 + $0xa0] sm:$0xff]  ;;  %v3894_v18 = vld [vmem:[%s5526_s24 + $0x98] sm:$0xff]  ;;  %v3893_v22 = vld [vmem:[%s5526_s24 + $0x90] sm:$0xff] }
  0x29   : > { %1084 = vmatpush.bf16.msra.mxu2 %v3897_v6  ;;  %v3903_v15 = vld [vmem:[%s5526_s24 + $0xe0] sm:$0xff]  ;;  %v3902_v21 = vld [vmem:[%s5526_s24 + $0xd8] sm:$0xff]  ;;  %v3901_v23 = vld [vmem:[%s5526_s24 + $0xd0] sm:$0xff] }
  0x2a   : > { %1097 = vmatpush.bf16.msra.mxu3 %v3905_v7  ;;  %v3876_v24 = vld [vmem:[%s5526_s24 + $0x8] sm:$0xff]  ;;  %v3875_v27 = vld [vmem:[%s5526_s24] sm:$0xff]  ;;  %v3914_v32 = vld [vmem:[%s5526_s24 + $0x138] sm:$0xff] }
  0x2b   : > { %1059 = vmatpush.bf16.msra.mxu0 %v3880_v8  ;;  %v3884_v25 = vld [vmem:[%s5526_s24 + $0x48] sm:$0xff]  ;;  %v3883_v29 = vld [vmem:[%s5526_s24 + $0x40] sm:$0xff]  ;;  %v3922_v33 = vld [vmem:[%s5526_s24 + $0x178] sm:$0xff] }
  0x2c   : > { %1072 = vmatpush.bf16.msra.mxu1 %v3888_v9  ;;  %v3892_v26 = vld [vmem:[%s5526_s24 + $0x88] sm:$0xff]  ;;  %v660_v30 = vld [vmem:[%s4487_s29] sm:$0xff]  ;;  %v662_v37 = vld [vmem:[%s4487_s29 + $0x10] sm:$0xff] }
  0x2d   : > { %1085 = vmatpush.bf16.msra.mxu2 %v3896_v10  ;;  %v3900_v28 = vld [vmem:[%s5526_s24 + $0xc8] sm:$0xff]  ;;  %v3891_v34 = vld [vmem:[%s5526_s24 + $0x80] sm:$0xff]  ;;  %v762_v35 = vpack.c.bf16 %v660_v30, %v660_v30  ;;  %v663_v39 = vld [vmem:[%s4487_s29 + $0x18] sm:$0xff]  ;;  %v764_v42 = vpack.c.bf16 %v662_v37, %v662_v37 }
  0x2e   : > { %1098 = vmatpush.bf16.msra.mxu3 %v3904_v11  ;;  %v661_v31 = vld [vmem:[%s4487_s29 + $0x8] sm:$0xff]  ;;  %v3899_v38 = vld [vmem:[%s5526_s24 + $0xc0] sm:$0xff]  ;;  %v3913_v40 = vld [vmem:[%s5526_s24 + $0x130] sm:$0xff]  ;;  %v765_v43 = vpack.c.bf16 %v663_v39, %v663_v39 }
  0x2f   : > { %1060 = vmatpush.bf16.msra.mxu0 %v3879_v12  ;;  %v763_v36 = vpack.c.bf16 %v661_v31, %v661_v31  ;;  %v3921_v41 = vld [vmem:[%s5526_s24 + $0x170] sm:$0xff]  ;;  %v3912_v44 = vld [vmem:[%s5526_s24 + $0x128] sm:$0xff]  ;;  %v3911_v46 = vld [vmem:[%s5526_s24 + $0x120] sm:$0xff] }
  0x30   : > { %1073 = vmatpush.bf16.msra.mxu1 %v3887_v13  ;;  %v3920_v45 = vld [vmem:[%s5526_s24 + $0x168] sm:$0xff]  ;;  %v3919_v47 = vld [vmem:[%s5526_s24 + $0x160] sm:$0xff]  ;;  %v3910_v48 = vld [vmem:[%s5526_s24 + $0x118] sm:$0xff] }
  0x31   : > { %1086 = vmatpush.bf16.msra.mxu2 %v3895_v14  ;;  %v3918_v49 = vld [vmem:[%s5526_s24 + $0x158] sm:$0xff]  ;;  %v3909_v50 = vld [vmem:[%s5526_s24 + $0x110] sm:$0xff]  ;;  %v3908_v52 = vld [vmem:[%s5526_s24 + $0x108] sm:$0xff] }
  0x32   : > { %1099 = vmatpush.bf16.msra.mxu3 %v3903_v15  ;;  %v3917_v51 = vld [vmem:[%s5526_s24 + $0x150] sm:$0xff]  ;;  %v3916_v53 = vld [vmem:[%s5526_s24 + $0x148] sm:$0xff]  ;;  %v3907_v54 = vld [vmem:[%s5526_s24 + $0x100] sm:$0xff]  ;;  %v4245_v15 = vmov 128.0  }
  0x33   : > { %1061 = vmatpush.bf16.msra.mxu0 %v3878_v16  ;;  %v3915_v55 = vld [vmem:[%s5526_s24 + $0x140] sm:$0xff]  ;;  %v665_v57 = vld [vmem:[%s4487_s29 + $0x28] sm:$0xff]  ;;  %4117 = vrcp.f32 %v4245_v15  ;;  %v3941_v37 = vld [vmem:[%s5529_s7 + $0x94] sm:$0xf] }
  0x34   : > { %1074 = vmatpush.bf16.msra.mxu1 %v3886_v17  ;;  %v664_v56 = vld [vmem:[%s4487_s29 + $0x20] sm:$0xff]  ;;  %v767_v59 = vpack.c.bf16 %v665_v57, %v665_v57  ;;  %v3307_v16 = vld [vmem:[%s5529_s7 + $0xa8] sm:$0xf]  ;;  %v3945_v17 = vld [vmem:[%s5529_s7 + $0xb0] sm:$0xf0] }
  0x35   : > { %1087 = vmatpush.bf16.msra.mxu2 %v3894_v18  ;;  %v766_v58 = vpack.c.bf16 %v664_v56, %v664_v56  ;;  %v768_v2 = vld [vmem:[%s5528_s20] sm:$0xff]  ;;  %v3944_v18 = vld [vmem:[%s5529_s7 + $0xac] sm:$0xf]  ;;  %v3273_v57 = vld [vmem:[%s5529_s7 + $0x6c] sm:$0xf0]  ;;  %s647_s20 = sand.u32 1, %s4235_s25  }
  0x36   : > { %1100 = vmatpush.bf16.msra.mxu3 %v3902_v21  ;;  %v3315_v21 = vld [vmem:[%s5529_s7 + $0xb0] sm:$0xf]  ;;  %v3297_v39 = vld [vmem:[%s5529_s7 + $0x9c] sm:$0xf0]  ;;  %s648_s26 = scalar_lea.vmem [#allocation2], %s647_s20  ;;  %s2957_s4 = scalar_lea.sflag [#allocation3], %s647_s20 }
  0x37   : > { %1062 = vmatpush.bf16.msra.mxu0 %v3877_v19  ;;  %v3308_v19 = vor.u32 %v3945_v17, %v3307_v16  ;;  %v3235_v17 = vld [vmem:[%s5529_s7 + $0x18] sm:$0xf]  ;;  %s2967_s1 = sshll.u32 %s648_s26, 4  ;;  %s2968_s1 = int_to_ptr.vmem [resolvable:$true] %s2967_s1 }
  0x38   : > { %1075 = vmatpush.bf16.msra.mxu1 %v3885_v20  ;;  %v3309_v20 = vld [vmem:[%s5529_s7 + $0xb4] sm:$0xf0] }
  0x39   : > { %1088 = vmatpush.bf16.msra.mxu2 %v3893_v22  ;;  %v3946_v22 = vld [vmem:[%s5529_s7 + $0xb8] sm:$0xf0] }
  0x3a   : > { %1101 = vmatpush.bf16.msra.mxu3 %v3901_v23  ;;  %v3312_v23 = vor.u32 %v3944_v18, %v3309_v20  ;;  %v3927_v18 = vld [vmem:[%s5529_s7 + $0x20] sm:$0xf0] }
  0x3b   : > { %1063 = vmatpush.bf16.msra.mxu0 %v3876_v24  ;;  %v3316_v24 = vor.u32 %v3946_v22, %v3315_v21  ;;  %v3236_v20 = vor.u32 %v3927_v18, %v3235_v17  ;;  %v3237_v21 = vld [vmem:[%s5529_s7 + $0x24] sm:$0xf0]  ;;  %v3243_v22 = vld [vmem:[%s5529_s7 + $0x20] sm:$0xf] }
  0x3c   : > { %1076 = vmatpush.bf16.msra.mxu1 %v3884_v25  ;;  %v4118_v25 = vpop.eup %4117 }
  0x3d   : > { %1089 = vmatpush.bf16.msra.mxu2 %v3892_v26  ;;  %v1140_v26 = vmul.f32 128.0, %v4118_v25  ;;  %vm1144_vm0 = vweird.f32 %v4118_v25 }
  0x3e   : > { %1102 = vmatpush.bf16.msra.mxu3 %v3900_v28 }
  0x3f   : > { %1064 = vmatpush.bf16.msra.mxu0 %v3875_v27  ;;  %v1141_v27 = vsub.f32 1.0, %v1140_v26  ;;  %v3223_v26 = vld [vmem:[%s5529_s7] sm:$0xf] }
  0x40   : > { %1077 = vmatpush.bf16.msra.mxu1 %v3883_v29 }
  0x41   : > { %1090 = vmatpush.bf16.msra.mxu2 %v3891_v34  ;;  %v1142_v28 = vmul.f32 %v4118_v25, %v1141_v27  ;;  %v3924_v27 = vld [vmem:[%s5529_s7 + $0x8] sm:$0xf0] }
  0x42   : > { %1065 = vmatmul.bf16.vlgmr.msra.gmra.mxu0 %v762_v35  ;;  %1103 = vmatpush.bf16.msra.mxu3 %v3899_v38  ;;  %v3295_v35 = vld [vmem:[%s5529_s7 + $0x90] sm:$0xf] }
  0x43   : > { %1109 = vmatpush.bf16.msrb.mxu0 %v3914_v32  ;;  %1078 = vmatmul.bf16.vlgmr.msra.gmra.mxu1 %v763_v36  ;;  %v1143_v29 = vadd.f32 %v4118_v25, %v1142_v28  ;;  %v3942_v36 = vld [vmem:[%s5529_s7 + $0x98] sm:$0xf0]  ;;  %v3923_v28 = vld [vmem:[%s5529_s7 + $0x4] sm:$0xf] }
  0x44   : > { %1122 = vmatpush.bf16.msrb.mxu1 %v3922_v33  ;;  %1091 = vmatmul.bf16.vlgmr.msra.gmra.mxu2 %v764_v42  ;;  %v3296_v38 = vor.u32 %v3942_v36, %v3295_v35  ;;  %v3300_v42 = vor.u32 %v3941_v37, %v3297_v39 }
  0x45   : > { %1104 = vmatmul.bf16.vlgmr.msra.gmra.mxu3 %v765_v43  ;;  %1341 = vmatpush.bf16.msrb.mxu2 %v3308_v19  ;;  %v4585_v30 = vsel %vm1144_vm0, %v4118_v25, %v1143_v29  ;;  %v3926_v19 = vld [vmem:[%s5529_s7 + $0x1c] sm:$0xf]  ;;  %v3224_v29 = vor.u32 %v3924_v27, %v3223_v26 }
  0x46   : > { %1354 = vmatpush.bf16.msrb.mxu3 %v3312_v23  ;;  %v3928_v23 = vld [vmem:[%s5529_s7 + $0x28] sm:$0xf0] }
  0x47   : > { %1110 = vmatpush.bf16.msrb.mxu0 %v3913_v40  ;;  %v3303_v40 = vld [vmem:[%s5529_s7 + $0x98] sm:$0xf]  ;;  %v3244_v25 = vor.u32 %v3928_v23, %v3243_v22 }
  0x48   : > { %1123 = vmatpush.bf16.msrb.mxu1 %v3921_v41  ;;  %v3943_v41 = vld [vmem:[%s5529_s7 + $0xa0] sm:$0xf0] }
  0x49   : > { %v3304_v43 = vor.u32 %v3943_v41, %v3303_v40  ;;  %1342 = vmatpush.bf16.msrb.mxu2 %v3296_v38 }
  0x4a   : > { %1355 = vmatpush.bf16.msrb.mxu3 %v3300_v42 }
  0x4b   : > { %1111 = vmatpush.bf16.msrb.mxu0 %v3912_v44  ;;  %v3283_v44 = vld [vmem:[%s5529_s7 + $0x78] sm:$0xf] }
  0x4c   : > { %1124 = vmatpush.bf16.msrb.mxu1 %v3920_v45  ;;  %v3939_v45 = vld [vmem:[%s5529_s7 + $0x80] sm:$0xf0] }
  0x4f   : > { %1112 = vmatpush.bf16.msrb.mxu0 %v3911_v46  ;;  %v3938_v46 = vld [vmem:[%s5529_s7 + $0x7c] sm:$0xf] }
  0x50   : > { %1125 = vmatpush.bf16.msrb.mxu1 %v3919_v47  ;;  %v3284_v47 = vor.u32 %v3939_v45, %v3283_v44 }
  0x52   : > { %1343 = vmatpush.bf16.msrb.mxu2 %v3284_v47 }
  0x53   : > { %1113 = vmatpush.bf16.msrb.mxu0 %v3910_v48  ;;  %v3285_v48 = vld [vmem:[%s5529_s7 + $0x84] sm:$0xf0] }
  0x54   : > { %1126 = vmatpush.bf16.msrb.mxu1 %v3918_v49  ;;  %v3291_v49 = vld [vmem:[%s5529_s7 + $0x80] sm:$0xf] }
  0x57   : > { %1114 = vmatpush.bf16.msrb.mxu0 %v3909_v50  ;;  %v3940_v50 = vld [vmem:[%s5529_s7 + $0x88] sm:$0xf0] }
  0x58   : > { %1127 = vmatpush.bf16.msrb.mxu1 %v3917_v51  ;;  %v3288_v51 = vor.u32 %v3938_v46, %v3285_v48  ;;  %v4100_v46 = vld [vmem:[%s5530_s23] ss:$0 sm:$0xff] }
  0x5a   : > { %1356 = vmatpush.bf16.msrb.mxu3 %v3288_v51 }
  0x5b   : > { %1115 = vmatpush.bf16.msrb.mxu0 %v3908_v52  ;;  %v3292_v52 = vor.u32 %v3940_v50, %v3291_v49  ;;  %v4101_v49 = vld [vmem:[%s5531_s6] ss:$0 sm:$0xff] }
  0x5c   : > { %1128 = vmatpush.bf16.msrb.mxu1 %v3916_v53  ;;  %v3271_v53 = vld [vmem:[%s5529_s7 + $0x60] sm:$0xf] }
  0x5f   : > { %1116 = vmatpush.bf16.msrb.mxu0 %v3907_v54  ;;  %v3936_v54 = vld [vmem:[%s5529_s7 + $0x68] sm:$0xf0] }
  0x60   : > { %1129 = vmatpush.bf16.msrb.mxu1 %v3915_v55  ;;  %v3935_v55 = vld [vmem:[%s5529_s7 + $0x64] sm:$0xf]  ;;  %v3272_v56 = vor.u32 %v3936_v54, %v3271_v53  ;;  %v1205_v53 = vld [vmem:[%s5482_s8] sm:$0x7] }
  0x61   : > { %v1209_v54 = vperm.slane %v1205_v53, 2 }
  0x62   : > { %1117 = vmatmul.bf16.vlgmr.msrb.gmra.mxu0 %v766_v58  ;;  %v3279_v58 = vld [vmem:[%s5529_s7 + $0x68] sm:$0xf]  ;;  %1344 = vmatpush.bf16.msrb.mxu2 %v3272_v56 }
  0x63   : > { %1130 = vmatmul.bf16.vlgmr.msrb.gmra.mxu1 %v767_v59  ;;  %1367 = vmatpush.bf16.msra.mxu0 %v3316_v24  ;;  %v3937_v59 = vld [vmem:[%s5529_s7 + $0x70] sm:$0xf0]  ;;  %v3240_v24 = vor.u32 %v3926_v19, %v3237_v21 }
  0x67   : > { %1368 = vmatpush.bf16.msra.mxu0 %v3304_v43 }
  0x6b   : > { %1369 = vmatpush.bf16.msra.mxu0 %v3292_v52 }
  0xbf   : > { %v1066_v60 = vpop.f32.mrf.mxu0 }
  0xc0   : > { %v1079_v61 = vpop.f32.mrf.mxu1  ;;  %v1067_v3 = vadd.f32 %v1066_v60, %v768_v2  ;;  %v3276_v60 = vor.u32 %v3935_v55, %v3273_v57  ;;  %v3261_v2 = vld [vmem:[%s5529_s7 + $0x54] sm:$0xf0]  ;;  %v1208_v57 = vperm.slane %v1205_v53, 1 }
  0xc2   : > { %v1080_v6 = vadd.f32 %v1079_v61, %v1067_v3  ;;  %v3280_v61 = vor.u32 %v3937_v59, %v3279_v58  ;;  %1357 = vmatpush.bf16.msrb.mxu3 %v3276_v60  ;;  %v3267_v3 = vld [vmem:[%s5529_s7 + $0x50] sm:$0xf]  ;;  %v1207_v58 = vperm.slane %v1205_v53, 0 }
  0xc4   : > { %1370 = vmatpush.bf16.msra.mxu0 %v3280_v61 }
  0xc7   : > { %v1068_v62 = vpop.f32.mrf.mxu0  ;;  %v1092_v0 = vpop.f32.mrf.mxu2 }
  0xc8   : > { %v1081_v63 = vpop.f32.mrf.mxu1  ;;  %v1105_v1 = vpop.f32.mrf.mxu3  ;;  %v1093_v7 = vadd.f32 %v1092_v0, %v1080_v6  ;;  %v3259_v62 = vld [vmem:[%s5529_s7 + $0x48] sm:$0xf]  ;;  %v3932_v0 = vld [vmem:[%s5529_s7 + $0x4c] sm:$0xf] }
  0xc9   : > { %v3933_v63 = vld [vmem:[%s5529_s7 + $0x50] sm:$0xf0] }
  0xca   : > { %v1106_v8 = vadd.f32 %v1105_v1, %v1093_v7  ;;  %v3260_v1 = vor.u32 %v3933_v63, %v3259_v62  ;;  %v3247_v7 = vld [vmem:[%s5529_s7 + $0x30] sm:$0xf] }
  0xcc   : > { %1345 = vmatpush.bf16.msrb.mxu2 %v3260_v1  ;;  %v4739_v1 = vld [vmem:[%s5532_s5 + $0x1] ss:$0 sm:$0xff] }
  0xcf   : > { %v1094_v4 = vpop.f32.mrf.mxu2 }
  0xd0   : > { %v1107_v5 = vpop.f32.mrf.mxu3  ;;  %v3934_v4 = vld [vmem:[%s5529_s7 + $0x58] sm:$0xf0] }
  0xd1   : > { %v3264_v5 = vor.u32 %v3932_v0, %v3261_v2  ;;  %v3268_v6 = vor.u32 %v3934_v4, %v3267_v3  ;;  %v4734_v0 = vld [vmem:[%s5532_s5] ss:$0 sm:$0xff] }
  0xd3   : > { %1358 = vmatpush.bf16.msrb.mxu3 %v3264_v5  ;;  %1371 = vmatpush.bf16.msra.mxu0 %v3268_v6 }
  0xdf   : > { %v1118_v9 = vpop.f32.mrf.mxu0 }
  0xe0   : > { %v1131_v10 = vpop.f32.mrf.mxu1  ;;  %v1119_v11 = vadd.f32 %v1118_v9, %v1106_v8  ;;  %v3930_v8 = vld [vmem:[%s5529_s7 + $0x38] sm:$0xf0]  ;;  %v3929_v9 = vld [vmem:[%s5529_s7 + $0x34] sm:$0xf] }
  0xe2   : > { %v4564_v12 = vadd.f32 %v1131_v10, %v1119_v11  ;;  %v3248_v10 = vor.u32 %v3930_v8, %v3247_v7  ;;  %v3249_v11 = vld [vmem:[%s5529_s7 + $0x3c] sm:$0xf0] }
  0xe3   : > { %v3252_v15 = vor.u32 %v3929_v9, %v3249_v11  ;;  %v4746_v9 = vld [vmem:[%s5532_s5 + $0x2] ss:$0 sm:$0xff] }
  0xe4   : > { %1137 = vadd.xlane.f32.xlu0 %v4564_v12  ;;  %1346 = vmatpush.bf16.msrb.mxu2 %v3248_v10  ;;  %v4751_v10 = vld [vmem:[%s5532_s5 + $0x3] ss:$0 sm:$0xff] }
  0xe5   : > { %1359 = vmatpush.bf16.msrb.mxu3 %v3252_v15  ;;  %v4758_v15 = vld [vmem:[%s5533_s28] ss:$0 sm:$0xff] }
  0xe7   : > { %v1120_v13 = vpop.f32.mrf.mxu0 }
  0xe8   : > { %v1133_v14 = vpop.f32.mrf.mxu1  ;;  %v3255_v13 = vld [vmem:[%s5529_s7 + $0x38] sm:$0xf]  ;;  %1347 = vmatpush.bf16.msrb.mxu2 %v3236_v20 }
  0xe9   : > { %v3931_v14 = vld [vmem:[%s5529_s7 + $0x40] sm:$0xf0]  ;;  %1360 = vmatpush.bf16.msrb.mxu3 %v3240_v24 }
  0xea   : > { %v3256_v16 = vor.u32 %v3931_v14, %v3255_v13 }
  0xec   : > { %1372 = vmatpush.bf16.msra.mxu0 %v3256_v16  ;;  %1348 = vmatpush.bf16.msrb.mxu2 %v3224_v29 }
  0xf0   : > { %1373 = vmatpush.bf16.msra.mxu0 %v3244_v25 }
 0x157   : > { %v1138_v31 = vpop.xlane.xlu0 %1137 }
 0x158   : > { %v1146_v32 = vmul.f32 %v4585_v30, %v1138_v31  ;;  %v3225_v31 = vld [vmem:[%s5529_s7 + $0xc] sm:$0xf0] }
 0x159   : > { %v3228_v35 = vor.u32 %v3923_v28, %v3225_v31 }
 0x15a   : > { %v4589_v33 = vsub.f32 %v4564_v12, %v1146_v32  ;;  %v3231_v32 = vld [vmem:[%s5529_s7 + $0x8] sm:$0xf] }
 0x15b   : > { %1361 = vmatpush.bf16.msrb.mxu3 %v3228_v35 }
 0x15c   : > { %v1148_v34 = vmul.f32 %v4589_v33, %v4589_v33 }
 0x15e   : > { %1149 = vadd.xlane.f32.xlu0 %v1148_v34  ;;  %v3925_v34 = vld [vmem:[%s5529_s7 + $0x10] sm:$0xf0] }
 0x15f   : > { %v3232_v36 = vor.u32 %v3925_v34, %v3231_v32 }
 0x161   : > { %1374 = vmatpush.bf16.msra.mxu0 %v3232_v36 }
 0x1d1   : > { %v1150_v37 = vpop.xlane.xlu0 %1149 }
 0x1d2   : > { %v1151_v38 = vmul.f32 %v1150_v37, %v4585_v30 }
 0x1d4   : > { %v1152_v39 = vadd.f32 1e-06, %v1151_v38 }
 0x1d6   : > { %4119 = vrsqrt.f32 %v1152_v39  ;;  %vm1159_vm2 = vweird.f32 %v1152_v39 }
 0x1dc   : > { %v4120_v40 = vpop.eup %4119 }
 0x1dd   : > { %v1154_v41 = vmul.f32 %v4120_v40, %v1152_v39  ;;  %vm1160_vm1 = vweird.f32 %v4120_v40 }
 0x1de   : > { %vm1161_vm3 = vmor %vm1159_vm2, %vm1160_vm1 }
 0x1df   : > { %v1155_v42 = vmul.f32 %v4120_v40, %v1154_v41 }
 0x1e1   : > { %v1156_v43 = vmul.f32 0.5, %v1155_v42 }
 0x1e3   : > { %v1157_v44 = vsub.f32 1.5, %v1156_v43 }
 0x1e5   : > { %v1158_v45 = vmul.f32 %v4120_v40, %v1157_v44 }
 0x1e7   : > { %v1162_v47 = vsel %vm1161_vm3, %v4120_v40, %v1158_v45 }
 0x1e8   : > { %v1163_v48 = vmul.f32 %v1162_v47, %v4589_v33 }
 0x1ea   : > { %v1167_v50 = vmul.f32 %v4100_v46, %v1163_v48 }
 0x1ec   : > { %v1171_v51 = vadd.f32 %v4101_v49, %v1167_v50 }
 0x1ee   : > { %v1204_v52 = vpack.c.bf16 %v1171_v51, %v1171_v51 }
 0x1f0   : > { %1349 = vmatmul.bf16.vlgmr.msrb.gmra.mxu2 %v1204_v52  ;;  %1362 = vmatmul.bf16.vlgmr.msrb.gmra.mxu3 %v1204_v52 }
 0x1f1   : > { %1375 = vmatmul.bf16.vlgmr.msra.gmra.mxu0 %v1204_v52 }
 0x26e   : > { %v1376_v55 = vpop.f32.mrf.mxu0 }
 0x26f   : > { %v1377_v56 = vadd.f32 %v1376_v55, %v1209_v54 }
 0x271   : > { %v1381_v33 = vpack.c.bf16 %v1377_v56, %v1377_v56 }
 0x273   : > { %v1485_v59 = vsel %vm1483_vm4, %v1381_v33, 0  ;;  %v1350_v60 = vpop.f32.mrf.mxu2  ;;  %v1363_v61 = vpop.f32.mrf.mxu3 }
 0x274   : > { %v1364_v62 = vadd.f32 %v1363_v61, %v1208_v57  ;;  %1494 = vmatpush.bf16.msra.mxu2 %v1485_v59  ;;  %v1351_v63 = vadd.f32 %v1350_v60, %v1207_v58 }
 0x276   : > { %v1380_v2 = vpack.c.bf16 %v1364_v62, %v1364_v62  ;;  %v1378_v3 = vpop.f32.mrf.mxu0  ;;  %v1394_v4 = vmul.f32 %v4734_v0, %v1351_v63  ;;  %v1395_v5 = vmul.f32 %v4739_v1, %v1351_v63  ;;  %v1396_v11 = vmul.f32 %v4746_v9, %v1351_v63 }
 0x277   : > { %v1397_v13 = vmul.f32 %v4751_v10, %v1351_v63 }
 0x278   : > { %1407 = vmatpush.bf16.xpose.msra.mxu1 %v1380_v2  ;;  %v1398_v8 = vpack.c.bf16 %v1395_v5, %v1394_v4  ;;  %v3954_v5 = vld [vmem:[%s5483_s9 + $0x38] sm:$0xff] }
 0x279   : > { %v1399_v14 = vpack.c.bf16 %v1397_v13, %v1396_v11  ;;  %1578 = vmatpush.bf16.msra.mxu3 %v3954_v5  ;;  %v3950_v11 = vld [vmem:[%s5483_s9 + $0x18] sm:$0xff]  ;;  %v3949_v13 = vld [vmem:[%s5483_s9 + $0x10] sm:$0xff] }
 0x27b   : > { %v1352_v6 = vpop.f32.mrf.mxu2  ;;  %v1365_v7 = vpop.f32.mrf.mxu3 }
 0x27c   : > { %v3953_v6 = vld [vmem:[%s5483_s9 + $0x30] sm:$0xff]  ;;  %v3952_v7 = vld [vmem:[%s5483_s9 + $0x28] sm:$0xff] }
 0x27d   : > { %1579 = vmatpush.bf16.msra.mxu3 %v3953_v6  ;;  %v3369_v6 = vld [vmem:[%s5487_s13 + $0x20] sm:$0xf] }
 0x27f   : > { %1408 = vmatmul.bf16.vlgmr.msra.gmra.mxu1 %v1398_v8  ;;  %v3951_v8 = vld [vmem:[%s5483_s9 + $0x20] sm:$0xff] }
 0x281   : > { %1580 = vmatpush.bf16.msra.mxu3 %v3952_v7  ;;  %v3960_v7 = vld [vmem:[%s5487_s13 + $0x24] sm:$0xf0] }
 0x285   : > { %1581 = vmatpush.bf16.msra.mxu3 %v3951_v8  ;;  %v3959_v8 = vld [vmem:[%s5487_s13 + $0x24] sm:$0xf] }
 0x289   : > { %1582 = vmatpush.bf16.msra.mxu3 %v3950_v11  ;;  %v3370_v11 = vor.u32 %v3960_v7, %v3369_v6  ;;  %v3983_v7 = vld [vmem:[%s5489_s15 + $0x60] sm:$0xff] }
 0x28d   : > { %1583 = vmatpush.bf16.msra.mxu3 %v3949_v13  ;;  %v3371_v13 = vld [vmem:[%s5487_s13 + $0x28] sm:$0xf0] }
 0x28f   : > { %1413 = vmatmul.bf16.gmra.mxu1 %v1399_v14  ;;  %v3948_v14 = vld [vmem:[%s5483_s9 + $0x8] sm:$0xff] }
 0x291   : > { %1584 = vmatpush.bf16.msra.mxu3 %v3948_v14  ;;  %v3374_v14 = vor.u32 %v3959_v8, %v3371_v13 }
 0x2fc   : > { %v1409_v16 = vpop.f32.mrf.mxu1 }
 0x2fd   : > { %v1419_v17 = vmul.f32 0.17677669, %v1409_v16  ;;  %v3947_v16 = vld [vmem:[%s5483_s9] sm:$0xff] }
 0x2fe   : > { %1585 = vmatpush.bf16.msra.mxu3 %v3947_v16  ;;  %v3361_v16 = vld [vmem:[%s5487_s13 + $0x10] sm:$0xf] }
 0x2ff   : > { %v1426_v18 = vadd.f32 %v4758_v15, %v1419_v17 }
 0x301   : > { %v1431_v19 = vsel %vm1430_vm5, %v1426_v18, -inf }
 0x302   : > { %1432 = vmax.xlane.f32.xlu1 %v1431_v19 }
 0x304   : > { %v1411_v20 = vpop.f32.mrf.mxu1 }
 0x305   : > { %v1420_v21 = vmul.f32 0.17677669, %v1411_v20 }
 0x307   : > { %v1427_v22 = vadd.f32 %v4758_v15, %v1420_v21 }
 0x309   : > { %v1434_v23 = vsel %vm1430_vm5, %v1427_v22, -inf }
 0x30a   : > { %1435 = vmax.xlane.f32.xlu1 %v1434_v23 }
 0x30c   : > { %v1414_v24 = vpop.f32.mrf.mxu1 }
 0x30d   : > { %v1421_v25 = vmul.f32 0.17677669, %v1414_v24 }
 0x30f   : > { %v1428_v26 = vadd.f32 %v4758_v15, %v1421_v25 }
 0x311   : > { %v1437_v27 = vsel %vm1430_vm5, %v1428_v26, -inf }
 0x312   : > { %1438 = vmax.xlane.f32.xlu2 %v1437_v27 }
 0x314   : > { %v1416_v28 = vpop.f32.mrf.mxu1 }
 0x315   : > { %v1422_v29 = vmul.f32 0.17677669, %v1416_v28 }
 0x317   : > { %v1429_v31 = vadd.f32 %v4758_v15, %v1422_v29  ;;  %v4107_v29 = vld [vmem:[%s5484_s10] ss:$0 sm:$0xff] }
 0x319   : > { %v1440_v32 = vsel %vm1430_vm5, %v1429_v31, -inf }
 0x31a   : > { %1441 = vmax.xlane.f32.xlu2 %v1440_v32 }
 0x375   : > { %v1433_v34 = vpop.xlane.xlu1 %1432 }
 0x376   : > { %v1443_v35 = vsub.f32 %v1426_v18, %v1433_v34 }
 0x378   : > { %v1447_v36 = vmul.f32 1.442695, %v1443_v35 }
 0x37a   : > { %4121 = vpow2.f32 %v1447_v36  ;;  %v3409_v36 = vld [vmem:[%s5487_s13 + $0x70] sm:$0xf] }
 0x37d   : > { %v1436_v37 = vpop.xlane.xlu1 %1435 }
 0x37e   : > { %v1444_v38 = vsub.f32 %v1427_v22, %v1436_v37  ;;  %v3970_v37 = vld [vmem:[%s5487_s13 + $0x74] sm:$0xf0] }
 0x380   : > { %v4122_v39 = vpop.eup %4121  ;;  %v1449_v40 = vmul.f32 1.442695, %v1444_v38  ;;  %v3969_v38 = vld [vmem:[%s5487_s13 + $0x74] sm:$0xf] }
 0x381   : > { %v1455_v41 = vsel %vm1430_vm5, %v4122_v39, 0.0 }
 0x382   : > { %4123 = vpow2.f32 %v1449_v40  ;;  %1456 = vadd.xlane.f32.xlu0 %v1455_v41 }
 0x385   : > { %v1439_v42 = vpop.xlane.xlu2 %1438 }
 0x386   : > { %v1445_v43 = vsub.f32 %v1428_v26, %v1439_v42 }
 0x388   : > { %v4124_v44 = vpop.eup %4123  ;;  %v1451_v45 = vmul.f32 1.442695, %v1445_v43 }
 0x389   : > { %v1458_v46 = vsel %vm1430_vm5, %v4124_v44, 0.0 }
 0x38a   : > { %4125 = vpow2.f32 %v1451_v45  ;;  %1459 = vadd.xlane.f32.xlu1 %v1458_v46  ;;  %v3401_v45 = vld [vmem:[%s5487_s13 + $0x60] sm:$0xf]  ;;  %v3968_v46 = vld [vmem:[%s5487_s13 + $0x64] sm:$0xf0] }
 0x38d   : > { %v1442_v47 = vpop.xlane.xlu2 %1441 }
 0x38e   : > { %v1446_v48 = vsub.f32 %v1429_v31, %v1442_v47  ;;  %v3967_v47 = vld [vmem:[%s5487_s13 + $0x64] sm:$0xf] }
 0x390   : > { %v4126_v49 = vpop.eup %4125  ;;  %v1453_v50 = vmul.f32 1.442695, %v1446_v48  ;;  %v3402_v48 = vor.u32 %v3968_v46, %v3401_v45 }
 0x391   : > { %v1461_v51 = vsel %vm1430_vm5, %v4126_v49, 0.0 }
 0x392   : > { %4127 = vpow2.f32 %v1453_v50  ;;  %1462 = vadd.xlane.f32.xlu2 %v1461_v51  ;;  %v3393_v51 = vld [vmem:[%s5487_s13 + $0x50] sm:$0xf] }
 0x398   : > { %v4128_v52 = vpop.eup %4127 }
 0x399   : > { %v1464_v53 = vsel %vm1430_vm5, %v4128_v52, 0.0 }
 0x39a   : > { %1465 = vadd.xlane.f32.xlu0 %v1464_v53  ;;  %v3965_v53 = vld [vmem:[%s5487_s13 + $0x54] sm:$0xf] }
 0x3f5   : > { %v1457_v54 = vpop.xlane.xlu0 %1456 }
 0x3f6   : > { %4129 = vrcp.f32 %v1457_v54 }
 0x3fc   : > { %v4130_v56 = vpop.eup %4129 }
 0x3fd   : > { %v1460_v55 = vpop.xlane.xlu1 %1459  ;;  %v1471_v33 = vmul.f32 %v4130_v56, %v4122_v39  ;;  %v3410_v39 = vor.u32 %v3970_v37, %v3409_v36 }
 0x3fe   : > { %4131 = vrcp.f32 %v1460_v55  ;;  %v3395_v55 = vld [vmem:[%s5487_s13 + $0x58] sm:$0xf0] }
 0x3ff   : > { %1730 = vmatpush.bf16.msrb.mxu1 %v3410_v39  ;;  %v3398_v56 = vor.u32 %v3965_v53, %v3395_v55  ;;  %v3976_v55 = vld [vmem:[%s5489_s15 + $0x28] sm:$0xff] }
 0x403   : > { %1731 = vmatpush.bf16.msrb.mxu1 %v3402_v48  ;;  %v3978_v48 = vld [vmem:[%s5489_s15 + $0x38] sm:$0xff] }
 0x404   : > { %v4132_v57 = vpop.eup %4131  ;;  %1966 = vmatpush.bf16.msrb.mxu0 %v3978_v48 }
 0x405   : > { %v1472_v58 = vmul.f32 %v4132_v57, %v4124_v44  ;;  %v1463_v60 = vpop.xlane.xlu2 %1462  ;;  %v3385_v57 = vld [vmem:[%s5487_s13 + $0x40] sm:$0xf] }
 0x406   : > { %4133 = vrcp.f32 %v1463_v60  ;;  %v3387_v60 = vld [vmem:[%s5487_s13 + $0x48] sm:$0xf0] }
 0x407   : > { %v1475_v59 = vpack.c.bf16 %v1472_v58, %v1471_v33  ;;  %v3964_v33 = vld [vmem:[%s5487_s13 + $0x44] sm:$0xf0]  ;;  %v3963_v58 = vld [vmem:[%s5487_s13 + $0x44] sm:$0xf] }
 0x409   : > { %3317 = vmatmul.msk.bf16.vlgmr.msra.gmra.mxu2 %vm1430_vm5, %v1475_v59  ;;  %v3386_v59 = vor.u32 %v3964_v33, %v3385_v57  ;;  %v3985_v33 = vld [vmem:[%s5489_s15 + $0x70] sm:$0xff] }
 0x40c   : > { %v4134_v62 = vpop.eup %4133 }
 0x40d   : > { %v1466_v61 = vpop.xlane.xlu0 %1465  ;;  %v1473_v2 = vmul.f32 %v4134_v62, %v4126_v49  ;;  %v3403_v49 = vld [vmem:[%s5487_s13 + $0x68] sm:$0xf0]  ;;  %v3377_v62 = vld [vmem:[%s5487_s13 + $0x30] sm:$0xf] }
 0x40e   : > { %4135 = vrcp.f32 %v1466_v61  ;;  %v3406_v50 = vor.u32 %v3967_v47, %v3403_v49  ;;  %v3390_v61 = vor.u32 %v3963_v58, %v3387_v60  ;;  %v1644_v47 = vld [vmem:[%s5488_s14] sm:$0x3] }
 0x40f   : > { %v1646_v49 = vperm.slane %v1644_v47, 0 }
 0x414   : > { %v4136_v63 = vpop.eup %4135 }
 0x415   : > { %v1474_v3 = vmul.f32 %v4136_v63, %v4128_v52  ;;  %v3966_v52 = vld [vmem:[%s5487_s13 + $0x54] sm:$0xf0] }
 0x416   : > { %v3394_v54 = vor.u32 %v3966_v52, %v3393_v51  ;;  %v3962_v63 = vld [vmem:[%s5487_s13 + $0x34] sm:$0xf0] }
 0x417   : > { %v1476_v4 = vpack.c.bf16 %v1474_v3, %v1473_v2  ;;  %v3961_v2 = vld [vmem:[%s5487_s13 + $0x34] sm:$0xf]  ;;  %v3378_v3 = vor.u32 %v3962_v63, %v3377_v62  ;;  %v3986_v52 = vld [vmem:[%s5489_s15 + $0x78] sm:$0xff] }
 0x418   : > { %1732 = vmatpush.bf16.msrb.mxu1 %v3394_v54  ;;  %v1647_v54 = vperm.slane %v1644_v47, 1  ;;  %1979 = vmatpush.bf16.msrb.mxu3 %v3986_v52 }
 0x419   : > { %3318 = vmatmul.msk.bf16.gmra.mxu2 %vm1430_vm5, %v1476_v4  ;;  %v3379_v4 = vld [vmem:[%s5487_s13 + $0x38] sm:$0xf0] }
 0x41a   : > { %v3382_v5 = vor.u32 %v3961_v2, %v3379_v4  ;;  %v3984_v2 = vld [vmem:[%s5489_s15 + $0x68] sm:$0xff]  ;;  %v3974_v4 = vld [vmem:[%s5489_s15 + $0x18] sm:$0xff] }
 0x41c   : > { %1733 = vmatpush.bf16.msrb.mxu1 %v3386_v59  ;;  %1980 = vmatpush.bf16.msrb.mxu3 %v3985_v33 }
 0x420   : > { %1734 = vmatpush.bf16.msrb.mxu1 %v3378_v3  ;;  %1981 = vmatpush.bf16.msrb.mxu3 %v3984_v2 }
 0x424   : > { %1735 = vmatpush.bf16.msrb.mxu1 %v3370_v11  ;;  %1982 = vmatpush.bf16.msrb.mxu3 %v3983_v7  ;;  %v3973_v11 = vld [vmem:[%s5489_s15 + $0x10] sm:$0xff] }
 0x48c   : > { %v1496_v17 = vpop.f32.mrf.mxu2 }
 0x48d   : > { %v1506_v21 = vmul.f32 %v4734_v0, %v1496_v17  ;;  %v3958_v17 = vld [vmem:[%s5487_s13 + $0x14] sm:$0xf0] }
 0x494   : > { %v1498_v18 = vpop.f32.mrf.mxu2 }
 0x495   : > { %v1507_v20 = vmul.f32 %v4739_v1, %v1498_v18  ;;  %v3957_v18 = vld [vmem:[%s5487_s13 + $0x14] sm:$0xf] }
 0x497   : > { %v1510_v23 = vadd.f32 %v1507_v20, %v1506_v21  ;;  %v3363_v20 = vld [vmem:[%s5487_s13 + $0x18] sm:$0xf0]  ;;  %v3353_v21 = vld [vmem:[%s5487_s13] sm:$0xf] }
 0x49c   : > { %v1501_v19 = vpop.f32.mrf.mxu2 }
 0x49d   : > { %v1508_v22 = vmul.f32 %v4746_v9, %v1501_v19  ;;  %v3362_v19 = vor.u32 %v3958_v17, %v3361_v16  ;;  %v3982_v16 = vld [vmem:[%s5489_s15 + $0x58] sm:$0xff] }
 0x49e   : > { %1983 = vmatpush.bf16.msrb.mxu3 %v3982_v16 }
 0x49f   : > { %v1511_v25 = vadd.f32 %v1510_v23, %v1508_v22  ;;  %v3956_v22 = vld [vmem:[%s5487_s13 + $0x4] sm:$0xf0]  ;;  %v3366_v23 = vor.u32 %v3957_v18, %v3363_v20  ;;  %1736 = vmatpush.bf16.msrb.mxu1 %v3362_v19 }
 0x4a0   : > { %v3972_v18 = vld [vmem:[%s5489_s15 + $0x8] sm:$0xff] }
 0x4a4   : > { %v1503_v24 = vpop.f32.mrf.mxu2 }
 0x4a5   : > { %v1509_v26 = vmul.f32 %v4751_v10, %v1503_v24  ;;  %v3955_v24 = vld [vmem:[%s5487_s13 + $0x4] sm:$0xf] }
 0x4a7   : > { %v1512_v27 = vadd.f32 %v1511_v25, %v1509_v26  ;;  %v3355_v25 = vld [vmem:[%s5487_s13 + $0x8] sm:$0xf0]  ;;  %v3354_v26 = vor.u32 %v3956_v22, %v3353_v21  ;;  %v3981_v22 = vld [vmem:[%s5489_s15 + $0x50] sm:$0xff] }
 0x4a8   : > { %1984 = vmatpush.bf16.msrb.mxu3 %v3981_v22 }
 0x4a9   : > { %v1529_v28 = vpack.c.bf16 %v1512_v27, %v1512_v27  ;;  %v3358_v27 = vor.u32 %v3955_v24, %v3355_v25  ;;  %1737 = vmatpush.bf16.msrb.mxu1 %v3354_v26  ;;  %v3971_v25 = vld [vmem:[%s5489_s15] sm:$0xff] }
 0x4ab   : > { %1586 = vmatmul.bf16.vlgmr.msra.gmra.mxu3 %v1529_v28 }
 0x52e   : > { %v1587_v31 = vpop.f32.mrf.mxu3 }
 0x52f   : > { %v1591_v32 = vadd.f32 %v1587_v31, %v4564_v12  ;;  %v3411_v12 = vld [vmem:[%s5487_s13 + $0x78] sm:$0xf0] }
 0x530   : > { %v3414_v40 = vor.u32 %v3969_v38, %v3411_v12  ;;  %v4108_v12 = vld [vmem:[%s5485_s11] ss:$0 sm:$0xff] }
 0x531   : > { %v4806_v34 = vadd.f32 %v4107_v29, %v1591_v32 }
 0x532   : > { %1743 = vmatpush.bf16.msrb.mxu2 %v3414_v40 }
 0x533   : > { %1599 = vadd.xlane.f32.xlu1 %v4806_v34 }
 0x536   : > { %v1589_v35 = vpop.f32.mrf.mxu3  ;;  %1744 = vmatpush.bf16.msrb.mxu2 %v3406_v50  ;;  %v3977_v50 = vld [vmem:[%s5489_s15 + $0x30] sm:$0xff] }
 0x537   : > { %1967 = vmatpush.bf16.msrb.mxu0 %v3977_v50 }
 0x53a   : > { %1745 = vmatpush.bf16.msrb.mxu2 %v3398_v56 }
 0x53b   : > { %1968 = vmatpush.bf16.msrb.mxu0 %v3976_v55 }
 0x53e   : > { %1746 = vmatpush.bf16.msrb.mxu2 %v3390_v61  ;;  %v3975_v61 = vld [vmem:[%s5489_s15 + $0x20] sm:$0xff] }
 0x53f   : > { %1969 = vmatpush.bf16.msrb.mxu0 %v3975_v61 }
 0x542   : > { %1747 = vmatpush.bf16.msrb.mxu2 %v3382_v5 }
 0x543   : > { %1970 = vmatpush.bf16.msrb.mxu0 %v3974_v4 }
 0x546   : > { %1748 = vmatpush.bf16.msrb.mxu2 %v3374_v14 }
 0x547   : > { %1971 = vmatpush.bf16.msrb.mxu0 %v3973_v11 }
 0x54a   : > { %1749 = vmatpush.bf16.msrb.mxu2 %v3366_v23 }
 0x54b   : > { %1972 = vmatpush.bf16.msrb.mxu0 %v3972_v18 }
 0x54e   : > { %1750 = vmatpush.bf16.msrb.mxu2 %v3358_v27 }
 0x54f   : > { %1973 = vmatpush.bf16.msrb.mxu0 %v3971_v25 }
 0x5a6   : > { %v1600_v41 = vpop.xlane.xlu1 %1599 }
 0x5a7   : > { %v1601_v42 = vmul.f32 %v1600_v41, %v4585_v30 }
 0x5a9   : > { %v4823_v43 = vsub.f32 %v4806_v34, %v1601_v42  ;;  %v4109_v42 = vld [vmem:[%s5486_s12] ss:$0 sm:$0xff] }
 0x5ab   : > { %v1603_v44 = vmul.f32 %v4823_v43, %v4823_v43 }
 0x5ad   : > { %1604 = vadd.xlane.f32.xlu2 %v1603_v44 }
 0x620   : > { %v1605_v28 = vpop.xlane.xlu2 %1604 }
 0x621   : > { %v1606_v29 = vmul.f32 %v1605_v28, %v4585_v30 }
 0x623   : > { %v1607_v31 = vadd.f32 1e-06, %v1606_v29  ;;  %v3980_v29 = vld [vmem:[%s5489_s15 + $0x48] sm:$0xff] }
 0x624   : > { %1985 = vmatpush.bf16.msrb.mxu3 %v3980_v29 }
 0x625   : > { %4137 = vrsqrt.f32 %v1607_v31  ;;  %vm1614_vm7 = vweird.f32 %v1607_v31 }
 0x62b   : > { %v4138_v32 = vpop.eup %4137 }
 0x62c   : > { %v1609_v35 = vmul.f32 %v4138_v32, %v1607_v31  ;;  %vm1615_vm6 = vweird.f32 %v4138_v32 }
 0x62d   : > { %vm1616_vm8 = vmor %vm1614_vm7, %vm1615_vm6 }
 0x62e   : > { %v1610_v36 = vmul.f32 %v4138_v32, %v1609_v35 }
 0x630   : > { %v1611_v37 = vmul.f32 0.5, %v1610_v36 }
 0x632   : > { %v1612_v38 = vsub.f32 1.5, %v1611_v37 }
 0x634   : > { %v1613_v39 = vmul.f32 %v4138_v32, %v1612_v38 }
 0x636   : > { %v1617_v40 = vsel %vm1616_vm8, %v4138_v32, %v1613_v39 }
 0x637   : > { %v1618_v41 = vmul.f32 %v1617_v40, %v4823_v43  ;;  %v3979_v40 = vld [vmem:[%s5489_s15 + $0x40] sm:$0xff] }
 0x638   : > { %1986 = vmatpush.bf16.msrb.mxu3 %v3979_v40  ;;  %v4010_v40 = vld [vmem:[%s5529_s7 + $0x178] sm:$0xf0] }
 0x639   : > { %v1622_v44 = vmul.f32 %v4108_v12, %v1618_v41 }
 0x63b   : > { %v1626_v45 = vadd.f32 %v4109_v42, %v1622_v44 }
 0x63d   : > { %v1643_v46 = vpack.c.bf16 %v1626_v45, %v1626_v45 }
 0x63f   : > { %1738 = vmatmul.bf16.vlgmr.msrb.gmra.mxu1 %v1643_v46  ;;  %1751 = vmatmul.bf16.vlgmr.msrb.gmra.mxu2 %v1643_v46 }
 0x6bc   : > { %v1739_v43 = vpop.f32.mrf.mxu1 }
 0x6bd   : > { %v4928_v51 = vadd.f32 %v1739_v43, %v1646_v49 }
 0x6bf   : > { %v4934_v53 = vmul.f32 0.70710677, %v4928_v51 }
 0x6c1   : > { %v1758_v56 = vand.u32 2147483647, %v4934_v53  ;;  %vm1824_vm1 = vcmp.ge.f32.partialorder %v4934_v53, 0.0 }
 0x6c2   : > { %v1752_v57 = vpop.f32.mrf.mxu2 }
 0x6c3   : > { %v1760_v58 = vmul.f32 0.3275911, %v1758_v56  ;;  %v4943_v59 = vadd.f32 %v1752_v57, %v1647_v54  ;;  %v1812_v32 = vsub.f32 0.0, %v1758_v56 }
 0x6c4   : > { %v1741_v60 = vpop.f32.mrf.mxu1 }
 0x6c5   : > { %v1762_v62 = vadd.f32 1.0, %v1760_v58  ;;  %v4949_v63 = vmul.f32 0.70710677, %v4943_v59  ;;  %v1814_v41 = vmul.f32 %v1812_v32, %v1758_v56  ;;  %v1831_v25 = vmul.f32 0.5, %v4943_v59  ;;  %v4110_v32 = vld [vmem:[%s5490_s16] ss:$0 sm:$0xff] }
 0x6c6   : > { %v3600_v59 = vld [vmem:[%s5529_s7 + $0x168] sm:$0xf] }
 0x6c7   : > { %4139 = vrcp.f32 %v1762_v62  ;;  %v4955_v3 = vand.u32 2147483647, %v4949_v63  ;;  %v1775_v19 = vand.u32 2147483648, %v1762_v62  ;;  %v1773_v21 = vand.u32 2147483647, %v1762_v62 }
 0x6c8   : > { %vm1769_vm10 = vweird.f32 %v1762_v62  ;;  %v1816_v43 = vmul.f32 1.442695, %v1814_v41  ;;  %vm1825_vm2 = vcmp.ge.f32.partialorder %v4949_v63, 0.0 }
 0x6c9   : > { %v1761_v5 = vmul.f32 0.3275911, %v4955_v3  ;;  %v1776_v26 = vor.u32 1.1754944e-38, %v1775_v19  ;;  %vm1774_vm12 = vcmp.eq.f32.partialorder %v1773_v21, 8.507059e+37  ;;  %v1813_v49 = vsub.f32 0.0, %v4955_v3 }
 0x6ca   : > { %v1754_v6 = vpop.f32.mrf.mxu2 }
 0x6cb   : > { %v1763_v8 = vadd.f32 1.0, %v1761_v5  ;;  %v1815_v57 = vmul.f32 %v1813_v49, %v4955_v3  ;;  %v4006_v49 = vld [vmem:[%s5529_s7 + $0x158] sm:$0xf0] }
 0x6cd   : > { %v4140_v13 = vpop.eup %4139  ;;  %4141 = vrcp.f32 %v1763_v8  ;;  %v1790_v37 = vand.u32 2147483648, %v1763_v8  ;;  %v1788_v39 = vand.u32 2147483647, %v1763_v8  ;;  %vm1784_vm14 = vweird.f32 %v1763_v8 }
 0x6ce   : > { %v1765_v14 = vmul.f32 %v4140_v13, %v1762_v62  ;;  %vm1770_vm9 = vweird.f32 %v4140_v13  ;;  %4143 = vpow2.f32 %v1816_v43  ;;  %v1818_v61 = vmul.f32 1.442695, %v1815_v57  ;;  %v4005_v43 = vld [vmem:[%s5529_s7 + $0x154] sm:$0xf] }
 0x6cf   : > { %vm1771_vm11 = vmor %vm1769_vm10, %vm1770_vm9  ;;  %v1791_v45 = vor.u32 1.1754944e-38, %v1790_v37  ;;  %vm1789_vm0 = vcmp.eq.f32.partialorder %v1788_v39, 8.507059e+37  ;;  %v4009_v37 = vld [vmem:[%s5529_s7 + $0x170] sm:$0xf0] }
 0x6d0   : > { %v1766_v17 = vsub.f32 1.0, %v1765_v14  ;;  %4145 = vpow2.f32 %v1818_v61  ;;  %v3601_v39 = vor.u32 %v4009_v37, %v3600_v59  ;;  %v3528_v37 = vld [vmem:[%s5529_s7 + $0xd8] sm:$0xf] }
 0x6d2   : > { %v1767_v20 = vmul.f32 %v4140_v13, %v1766_v17  ;;  %v1830_v17 = vmul.f32 0.5, %v4928_v51  ;;  %2201 = vmatpush.bf16.msra.mxu1 %v3601_v39  ;;  %v3990_v39 = vld [vmem:[%s5529_s7 + $0xdc] sm:$0xf] }
 0x6d3   : > { %v4142_v23 = vpop.eup %4141 }
 0x6d4   : > { %v1768_v24 = vadd.f32 %v4140_v13, %v1767_v20  ;;  %v1780_v27 = vmul.f32 %v4142_v23, %v1763_v8  ;;  %vm1785_vm13 = vweird.f32 %v4142_v23  ;;  %v4144_v4 = vpop.eup %4143 }
 0x6d5   : > { %vm1786_vm15 = vmor %vm1784_vm14, %vm1785_vm13 }
 0x6d6   : > { %v1772_v28 = vsel %vm1771_vm11, %v4140_v13, %v1768_v24  ;;  %v1781_v35 = vsub.f32 1.0, %v1780_v27  ;;  %v4146_v3 = vpop.eup %4145 }
 0x6d7   : > { %v1777_v31 = vsel %vm1774_vm12, %v1776_v26, %v1772_v28 }
 0x6d8   : > { %v1794_v36 = vmul.f32 1.0614054, %v1777_v31  ;;  %v1782_v38 = vmul.f32 %v4142_v23, %v1781_v35 }
 0x6da   : > { %v1796_v12 = vadd.f32 -1.4531521, %v1794_v36  ;;  %v1783_v42 = vadd.f32 %v4142_v23, %v1782_v38  ;;  %v4008_v38 = vld [vmem:[%s5529_s7 + $0x16c] sm:$0xf] }
 0x6dc   : > { %v1798_v44 = vmul.f32 %v1796_v12, %v1777_v31  ;;  %v1787_v46 = vsel %vm1786_vm15, %v4142_v23, %v1783_v42  ;;  %v3608_v12 = vld [vmem:[%s5529_s7 + $0x170] sm:$0xf] }
 0x6dd   : > { %v1792_v48 = vsel %vm1789_vm0, %v1791_v45, %v1787_v46  ;;  %v3609_v42 = vor.u32 %v4010_v40, %v3608_v12  ;;  %v3530_v12 = vld [vmem:[%s5529_s7 + $0xe4] sm:$0xf0]  ;;  %v3536_v40 = vld [vmem:[%s5529_s7 + $0xe0] sm:$0xf] }
 0x6de   : > { %v1800_v47 = vadd.f32 1.4214138, %v1798_v44  ;;  %v1795_v50 = vmul.f32 1.0614054, %v1792_v48 }
 0x6df   : > { %2227 = vmatpush.bf16.msra.mxu0 %v3609_v42  ;;  %v3533_v42 = vor.u32 %v3990_v39, %v3530_v12 }
 0x6e0   : > { %v1802_v52 = vmul.f32 %v1800_v47, %v1777_v31  ;;  %v1797_v54 = vadd.f32 -1.4531521, %v1795_v50 }
 0x6e2   : > { %v1804_v55 = vadd.f32 -0.28449672, %v1802_v52  ;;  %v1799_v56 = vmul.f32 %v1797_v54, %v1792_v48  ;;  %v3590_v52 = vld [vmem:[%s5529_s7 + $0x15c] sm:$0xf0]  ;;  %v3596_v54 = vld [vmem:[%s5529_s7 + $0x158] sm:$0xf] }
 0x6e3   : > { %v3593_v57 = vor.u32 %v4005_v43, %v3590_v52  ;;  %v3518_v43 = vld [vmem:[%s5529_s7 + $0xcc] sm:$0xf0]  ;;  %v3989_v52 = vld [vmem:[%s5529_s7 + $0xd0] sm:$0xf0] }
 0x6e4   : > { %v1806_v33 = vmul.f32 %v1804_v55, %v1777_v31  ;;  %v1801_v58 = vadd.f32 1.4214138, %v1799_v56  ;;  %v4007_v55 = vld [vmem:[%s5529_s7 + $0x160] sm:$0xf0] }
 0x6e5   : > { %v3597_v56 = vor.u32 %v4007_v55, %v3596_v54 }
 0x6e6   : > { %v1808_v60 = vadd.f32 0.2548296, %v1806_v33  ;;  %v1803_v62 = vmul.f32 %v1801_v58, %v1792_v48  ;;  %v3576_v33 = vld [vmem:[%s5529_s7 + $0x138] sm:$0xf]  ;;  %v4003_v58 = vld [vmem:[%s5529_s7 + $0x140] sm:$0xf0] }
 0x6e7   : > { %2228 = vmatpush.bf16.msra.mxu0 %v3597_v56  ;;  %v3577_v61 = vor.u32 %v4003_v58, %v3576_v33 }
 0x6e8   : > { %v1810_v2 = vmul.f32 %v1808_v60, %v1777_v31  ;;  %v1805_v5 = vadd.f32 -0.28449672, %v1803_v62  ;;  %v4002_v60 = vld [vmem:[%s5529_s7 + $0x13c] sm:$0xf]  ;;  %v3578_v62 = vld [vmem:[%s5529_s7 + $0x144] sm:$0xf0] }
 0x6ea   : > { %v1820_v6 = vmul.f32 %v4144_v4, %v1810_v2  ;;  %v1807_v7 = vmul.f32 %v1805_v5, %v1792_v48  ;;  %v3584_v2 = vld [vmem:[%s5529_s7 + $0x140] sm:$0xf]  ;;  %v4004_v4 = vld [vmem:[%s5529_s7 + $0x148] sm:$0xf0]  ;;  %v3581_v5 = vor.u32 %v4002_v60, %v3578_v62 }
 0x6ec   : > { %v1822_v8 = vsub.f32 1.0, %v1820_v6  ;;  %v1809_v11 = vadd.f32 0.2548296, %v1807_v7  ;;  %v3585_v6 = vor.u32 %v4004_v4, %v3584_v2  ;;  %v3564_v7 = vld [vmem:[%s5529_s7 + $0x120] sm:$0xf] }
 0x6ee   : > { %v1826_v13 = vsub.f32 0.0, %v1822_v8  ;;  %v1811_v14 = vmul.f32 %v1809_v11, %v1792_v48  ;;  %v3588_v48 = vld [vmem:[%s5529_s7 + $0x150] sm:$0xf]  ;;  %2229 = vmatpush.bf16.msra.mxu0 %v3585_v6  ;;  %v3999_v11 = vld [vmem:[%s5529_s7 + $0x124] sm:$0xf] }
 0x6ef   : > { %v3589_v50 = vor.u32 %v4006_v49, %v3588_v48  ;;  %v3987_v48 = vld [vmem:[%s5529_s7 + $0xc4] sm:$0xf] }
 0x6f0   : > { %v1828_v16 = vsel %vm1824_vm1, %v1822_v8, %v1826_v13  ;;  %v1821_v19 = vmul.f32 %v4146_v3, %v1811_v14  ;;  %v4000_v8 = vld [vmem:[%s5529_s7 + $0x128] sm:$0xf0]  ;;  %v3566_v14 = vld [vmem:[%s5529_s7 + $0x12c] sm:$0xf0]  ;;  %v3572_v3 = vld [vmem:[%s5529_s7 + $0x128] sm:$0xf]  ;;  %v3521_v54 = vor.u32 %v3987_v48, %v3518_v43 }
 0x6f1   : > { %v1832_v18 = vadd.f32 1.0, %v1828_v16  ;;  %2202 = vmatpush.bf16.msra.mxu1 %v3589_v50  ;;  %v3565_v13 = vor.u32 %v4000_v8, %v3564_v7  ;;  %v4001_v16 = vld [vmem:[%s5529_s7 + $0x130] sm:$0xf0]  ;;  %v3524_v50 = vld [vmem:[%s5529_s7 + $0xc8] sm:$0xf] }
 0x6f2   : > { %v1823_v21 = vsub.f32 1.0, %v1821_v19  ;;  %v3552_v19 = vld [vmem:[%s5529_s7 + $0x108] sm:$0xf]  ;;  %v3525_v55 = vor.u32 %v3989_v52, %v3524_v50  ;;  %v4112_v8 = vld [vmem:[%s5531_s6 + $0x1] ss:$0 sm:$0xff]  ;;  %s2969_s6 = sshll.u32 %s2965_s27, 4  ;;  %s2970_s6 = int_to_ptr.hbm [resolvable:$true] %s2969_s6 }
 0x6f3   : > { %v1834_v20 = vmul.f32 %v1832_v18, %v1830_v17  ;;  %v3569_v17 = vor.u32 %v3999_v11, %v3566_v14  ;;  %v3573_v18 = vor.u32 %v4001_v16, %v3572_v3  ;;  %v3513_v3 = vld [vmem:[%s5482_s8 + $0x3] sm:$0x7]  ;;  %s4195_s28 = sshra.s32 %s2970_s6, 4  ;;  %s4196_s28 = int_to_ptr.hbm [resolvable:$true] %s4195_s28 }
 0x6f4   : > { %v1827_v23 = vsub.f32 0.0, %v1823_v21  ;;  %v2069_v16 = vperm.slane %v3513_v3, 2  ;;  %p4202_p0 = scmp.lt.s32.totalorder %s4196_s28, %s5495_s21 }
 0x6f5   : > { %v1868_v22 = vpack.c.bf16 %v1834_v20, %v1834_v20  ;;  %2203 = vmatpush.bf16.msra.mxu1 %v3577_v61  ;;  %2230 = vmatpush.bf16.msra.mxu0 %v3573_v18  ;;  %v3997_v20 = vld [vmem:[%s5529_s7 + $0x110] sm:$0xf0] }
 0x6f6   : > { %v1829_v24 = vsel %vm1825_vm2, %v1823_v21, %v1827_v23  ;;  %v3996_v21 = vld [vmem:[%s5529_s7 + $0x10c] sm:$0xf]  ;;  %v3554_v23 = vld [vmem:[%s5529_s7 + $0x114] sm:$0xf0] }
 0x6f7   : > { %1974 = vmatmul.bf16.vlgmr.msrb.gmra.mxu0 %v1868_v22  ;;  %v1833_v26 = vadd.f32 1.0, %v1829_v24  ;;  %v3553_v22 = vor.u32 %v3997_v20, %v3552_v19  ;;  %v3560_v24 = vld [vmem:[%s5529_s7 + $0x110] sm:$0xf]  ;;  %v2068_v20 = vperm.slane %v3513_v3, 1 }
 0x6f9   : > { %v1835_v27 = vmul.f32 %v1833_v26, %v1831_v25  ;;  %2204 = vmatpush.bf16.msra.mxu1 %v3565_v13  ;;  %v3998_v25 = vld [vmem:[%s5529_s7 + $0x118] sm:$0xf0]  ;;  %v3557_v26 = vor.u32 %v3996_v21, %v3554_v23 }
 0x6fb   : > { %v1869_v53 = vpack.c.bf16 %v1835_v27, %v1835_v27  ;;  %v3561_v27 = vor.u32 %v3998_v25, %v3560_v24 }
 0x6fd   : > { %1987 = vmatmul.bf16.vlgmr.msrb.gmra.mxu3 %v1869_v53  ;;  %2205 = vmatpush.bf16.msra.mxu1 %v3553_v22  ;;  %v3540_v53 = vld [vmem:[%s5529_s7 + $0xf0] sm:$0xf] }
 0x6fe   : > { %2231 = vmatpush.bf16.msra.mxu0 %v3561_v27 }
 0x774   : > { %v1975_v28 = vpop.f32.mrf.mxu0 }
 0x77c   : > { %v1977_v29 = vpop.f32.mrf.mxu0 }
 0x77d   : > { %v3993_v29 = vld [vmem:[%s5529_s7 + $0xf4] sm:$0xf] }
 0x780   : > { %v1988_v31 = vpop.f32.mrf.mxu3 }
 0x781   : > { %v1989_v51 = vadd.f32 %v1988_v31, %v1975_v28  ;;  %v3994_v28 = vld [vmem:[%s5529_s7 + $0xf8] sm:$0xf0] }
 0x782   : > { %v3541_v31 = vor.u32 %v3994_v28, %v3540_v53 }
 0x783   : > { %v1992_v35 = vadd.f32 %v1989_v51, %v4806_v34  ;;  %v3602_v34 = vld [vmem:[%s5529_s7 + $0x174] sm:$0xf0]  ;;  %v3542_v51 = vld [vmem:[%s5529_s7 + $0xfc] sm:$0xf0] }
 0x784   : > { %v3605_v41 = vor.u32 %v4008_v38, %v3602_v34  ;;  %2206 = vmatpush.bf16.msra.mxu1 %v3541_v31  ;;  %v3991_v38 = vld [vmem:[%s5529_s7 + $0xe0] sm:$0xf0] }
 0x785   : > { %v4995_v36 = vadd.f32 %v4110_v32, %v1992_v35  ;;  %v3548_v32 = vld [vmem:[%s5529_s7 + $0xf8] sm:$0xf]  ;;  %v3995_v35 = vld [vmem:[%s5529_s7 + $0x100] sm:$0xf0]  ;;  %v3529_v34 = vor.u32 %v3991_v38, %v3528_v37 }
 0x786   : > { %2214 = vmatpush.bf16.msra.mxu2 %v3605_v41  ;;  %v3549_v59 = vor.u32 %v3995_v35, %v3548_v32  ;;  %v3992_v41 = vld [vmem:[%s5529_s7 + $0xe8] sm:$0xf0] }
 0x787   : > { %2002 = vadd.xlane.f32.xlu0 %v4995_v36 }
 0x788   : > { %v1990_v63 = vpop.f32.mrf.mxu3  ;;  %2232 = vmatpush.bf16.msra.mxu0 %v3549_v59  ;;  %2207 = vmatpush.bf16.msra.mxu1 %v3529_v34 }
 0x789   : > { %v3545_v63 = vor.u32 %v3993_v29, %v3542_v51 }
 0x78a   : > { %2215 = vmatpush.bf16.msra.mxu2 %v3593_v57 }
 0x78e   : > { %2216 = vmatpush.bf16.msra.mxu2 %v3581_v5  ;;  %v4111_v5 = vld [vmem:[%s5530_s23 + $0x1] ss:$0 sm:$0xff] }
 0x792   : > { %2217 = vmatpush.bf16.msra.mxu2 %v3569_v17 }
 0x796   : > { %2218 = vmatpush.bf16.msra.mxu2 %v3557_v26 }
 0x79a   : > { %2219 = vmatpush.bf16.msra.mxu2 %v3545_v63 }
 0x79e   : > { %2220 = vmatpush.bf16.msra.mxu2 %v3533_v42 }
 0x7a2   : > { %2221 = vmatpush.bf16.msra.mxu2 %v3521_v54 }
 0x7fa   : > { %v2003_v44 = vpop.xlane.xlu0 %2002 }
 0x7fb   : > { %v2004_v45 = vmul.f32 %v2003_v44, %v4585_v30  ;;  %v3537_v44 = vor.u32 %v3992_v41, %v3536_v40 }
 0x7fd   : > { %v5018_v46 = vsub.f32 %v4995_v36, %v2004_v45  ;;  %v3516_v45 = vld [vmem:[%s5529_s7 + $0xc0] sm:$0xf]  ;;  %2233 = vmatpush.bf16.msra.mxu0 %v3537_v44 }
 0x7ff   : > { %v2006_v47 = vmul.f32 %v5018_v46, %v5018_v46 }
 0x801   : > { %2007 = vadd.xlane.f32.xlu1 %v2006_v47  ;;  %v3988_v47 = vld [vmem:[%s5529_s7 + $0xc8] sm:$0xf0]  ;;  %2234 = vmatpush.bf16.msra.mxu0 %v3525_v55  ;;  %s4197_s7 = scalar_lea.hbm %s4196_s28, 1 }
 0x802   : > { %v3517_v49 = vor.u32 %v3988_v47, %v3516_v45  ;;  %p4198_p11 = scmp.ne.s32.totalorder %s4196_s28, %s4197_s7 }
 0x804   : > { %2208 = vmatpush.bf16.msra.mxu1 %v3517_v49  ;;  %p4199_p12 = pnand %p4198_p11, %p4394_p5 }
 0x806   : > { %p4200_p13 = pneg %p4199_p12 }
 0x874   : > { %v2008_v57 = vpop.xlane.xlu1 %2007 }
 0x875   : > { %v2009_v56 = vmul.f32 %v2008_v57, %v4585_v30 }
 0x877   : > { %v2010_v33 = vadd.f32 1e-06, %v2009_v56 }
 0x879   : > { %4147 = vrsqrt.f32 %v2010_v33  ;;  %vm2017_vm6 = vweird.f32 %v2010_v33 }
 0x87f   : > { %v4148_v58 = vpop.eup %4147 }
 0x880   : > { %v2012_v60 = vmul.f32 %v4148_v58, %v2010_v33  ;;  %vm2018_vm3 = vweird.f32 %v4148_v58 }
 0x881   : > { %vm2019_vm7 = vmor %vm2017_vm6, %vm2018_vm3  ;;  %vm2851_vm3 = vcmask 1040384  }
 0x882   : > { %v2013_v61 = vmul.f32 %v4148_v58, %v2012_v60 }
 0x884   : > { %v2014_v62 = vmul.f32 0.5, %v2013_v61 }
 0x886   : > { %v2015_v2 = vsub.f32 1.5, %v2014_v62 }
 0x888   : > { %v2016_v4 = vmul.f32 %v4148_v58, %v2015_v2 }
 0x88a   : > { %v2020_v6 = vsel %vm2019_vm7, %v4148_v58, %v2016_v4 }
 0x88b   : > { %v2021_v7 = vmul.f32 %v2020_v6, %v5018_v46  ;;  %v2067_v46 = vperm.slane %v3513_v3, 0 }
 0x88d   : > { %v2025_v11 = vmul.f32 %v4111_v5, %v2021_v7 }
 0x88f   : > { %v2029_v13 = vadd.f32 %v4112_v8, %v2025_v11 }
 0x891   : > { %v2063_v14 = vpack.c.bf16 %v2029_v13, %v2029_v13 }
 0x893   : > { %2209 = vmatmul.bf16.vlgmr.msra.gmra.mxu1 %v2063_v14  ;;  %2222 = vmatmul.bf16.vlgmr.msra.gmra.mxu2 %v2063_v14 }
 0x894   : > { %2235 = vmatmul.bf16.vlgmr.msra.gmra.mxu0 %v2063_v14 }
 0x910   : > { %v2210_v17 = vpop.f32.mrf.mxu1 }
 0x911   : > { %v2236_v18 = vpop.f32.mrf.mxu0  ;;  %v2211_v25 = vadd.f32 %v2210_v17, %v2067_v46 }
 0x912   : > { %v2237_v19 = vadd.f32 %v2236_v18, %v2069_v16 }
 0x913   : > { %v2242_v28 = vmul.f32 %v4734_v0, %v2211_v25  ;;  %v2243_v29 = vmul.f32 %v4739_v1, %v2211_v25  ;;  %v2244_v32 = vmul.f32 %v4746_v9, %v2211_v25  ;;  %v2245_v35 = vmul.f32 %v4751_v10, %v2211_v25  ;;  %v4017_v25 = vld [vmem:[%s5483_s9 + $0x70] sm:$0xff] }
 0x914   : > { %v2241_v21 = vpack.c.bf16 %v2237_v19, %v2237_v19 }
 0x915   : > { %v2246_v51 = vpack.c.bf16 %v2243_v29, %v2242_v28  ;;  %v2247_v63 = vpack.c.bf16 %v2245_v35, %v2244_v32  ;;  %v4013_v28 = vld [vmem:[%s5483_s9 + $0x50] sm:$0xff]  ;;  %v4012_v29 = vld [vmem:[%s5483_s9 + $0x48] sm:$0xff] }
 0x916   : > { %v2328_v22 = vsel %vm1483_vm4, %v2241_v21, 0  ;;  %v2223_v23 = vpop.f32.mrf.mxu2 }
 0x917   : > { %v2224_v24 = vadd.f32 %v2223_v23, %v2068_v20  ;;  %2337 = vmatpush.bf16.msrb.mxu1 %v2328_v22 }
 0x918   : > { %v2212_v26 = vpop.f32.mrf.mxu1 }
 0x919   : > { %v2240_v27 = vpack.c.bf16 %v2224_v24, %v2224_v24  ;;  %v2238_v53 = vpop.f32.mrf.mxu0  ;;  %v4018_v24 = vld [vmem:[%s5483_s9 + $0x78] sm:$0xff]  ;;  %v4016_v26 = vld [vmem:[%s5483_s9 + $0x68] sm:$0xff] }
 0x91a   : > { %2422 = vmatpush.bf16.msrb.mxu2 %v4018_v24  ;;  %v4014_v53 = vld [vmem:[%s5483_s9 + $0x58] sm:$0xff]  ;;  %v3698_v24 = vld [vmem:[%s5487_s13 + $0xa0] sm:$0xf] }
 0x91b   : > { %2255 = vmatpush.bf16.xpose.msra.mxu3 %v2240_v27  ;;  %v4015_v27 = vld [vmem:[%s5483_s9 + $0x60] sm:$0xff] }
 0x91e   : > { %v2225_v31 = vpop.f32.mrf.mxu2  ;;  %2423 = vmatpush.bf16.msrb.mxu2 %v4017_v25  ;;  %v4024_v25 = vld [vmem:[%s5487_s13 + $0xa4] sm:$0xf0] }
 0x91f   : > { %v4011_v31 = vld [vmem:[%s5483_s9 + $0x40] sm:$0xff] }
 0x922   : > { %2256 = vmatmul.bf16.vlgmr.msra.gmra.mxu3 %v2246_v51  ;;  %2424 = vmatpush.bf16.msrb.mxu2 %v4016_v26  ;;  %v4023_v26 = vld [vmem:[%s5487_s13 + $0xa4] sm:$0xf] }
 0x926   : > { %2425 = vmatpush.bf16.msrb.mxu2 %v4015_v27  ;;  %v3699_v27 = vor.u32 %v4024_v25, %v3698_v24  ;;  %v4038_v25 = vld [vmem:[%s5489_s15 + $0x98] sm:$0xff] }
 0x92a   : > { %2426 = vmatpush.bf16.msrb.mxu2 %v4014_v53  ;;  %v3700_v53 = vld [vmem:[%s5487_s13 + $0xa8] sm:$0xf0] }
 0x92e   : > { %2427 = vmatpush.bf16.msrb.mxu2 %v4013_v28  ;;  %v3703_v28 = vor.u32 %v4023_v26, %v3700_v53 }
 0x932   : > { %2261 = vmatmul.bf16.gmra.mxu3 %v2247_v63  ;;  %2428 = vmatpush.bf16.msrb.mxu2 %v4012_v29  ;;  %v4177_v63 = vld [vmem:[%s5532_s5 + $0x1] ss:$0 sm:$0xff]  ;;  %v3690_v29 = vld [vmem:[%s5487_s13 + $0x90] sm:$0xf] }
 0x936   : > { %2429 = vmatpush.bf16.msrb.mxu2 %v4011_v31  ;;  %v4022_v31 = vld [vmem:[%s5487_s13 + $0x94] sm:$0xf0] }
 0x9a5   : > { %v2257_v59 = vpop.f32.mrf.mxu3 }
 0x9a6   : > { %v2267_v37 = vmul.f32 0.17677669, %v2257_v59 }
 0x9a8   : > { %v2271_v38 = vadd.f32 %v4758_v15, %v2267_v37  ;;  %v4178_v37 = vld [vmem:[%s5532_s5] ss:$0 sm:$0xff] }
 0x9aa   : > { %v2275_v39 = vsel %vm1430_vm5, %v2271_v38, -inf }
 0x9ab   : > { %2276 = vmax.xlane.f32.xlu2 %v2275_v39  ;;  %v4179_v39 = vld [vmem:[%s5532_s5 + $0x2] ss:$0 sm:$0xff] }
 0x9ad   : > { %v2259_v34 = vpop.f32.mrf.mxu3 }
 0x9ae   : > { %v2268_v0 = vmul.f32 0.17677669, %v2259_v34 }
 0x9b0   : > { %v2272_v1 = vadd.f32 %v4758_v15, %v2268_v0 }
 0x9b2   : > { %v2278_v12 = vsel %vm1430_vm5, %v2272_v1, -inf }
 0x9b3   : > { %2279 = vmax.xlane.f32.xlu0 %v2278_v12 }
 0x9b5   : > { %v2262_v40 = vpop.f32.mrf.mxu3 }
 0x9b6   : > { %v2269_v9 = vmul.f32 0.17677669, %v2262_v40  ;;  %v4180_v40 = vld [vmem:[%s5532_s5 + $0x3] ss:$0 sm:$0xff]  ;;  %s5535_s5 = sld [smem:[#allocation20_spill]] }
 0x9b8   : > { %v2273_v10 = vadd.f32 %v4758_v15, %v2269_v9 }
 0x9ba   : > { %v2281_v41 = vsel %vm1430_vm5, %v2273_v10, -inf }
 0x9bb   : > { %2282 = vmax.xlane.f32.xlu1 %v2281_v41 }
 0x9bd   : > { %v2264_v42 = vpop.f32.mrf.mxu3 }
 0x9be   : > { %v2270_v44 = vmul.f32 0.17677669, %v2264_v42  ;;  %v4113_v42 = vld [vmem:[%s5484_s10 + $0x1] ss:$0 sm:$0xff] }
 0x9c0   : > { %v2274_v45 = vadd.f32 %v4758_v15, %v2270_v44 }
 0x9c2   : > { %v2284_v47 = vsel %vm1430_vm5, %v2274_v45, -inf }
 0x9c3   : > { %2285 = vmax.xlane.f32.xlu2 %v2284_v47 }
 0xa1e   : > { %v2277_v48 = vpop.xlane.xlu2 %2276 }
 0xa1f   : > { %v2287_v49 = vsub.f32 %v2271_v38, %v2277_v48 }
 0xa21   : > { %v2291_v43 = vmul.f32 1.442695, %v2287_v49  ;;  %v3738_v49 = vld [vmem:[%s5487_s13 + $0xf0] sm:$0xf] }
 0xa23   : > { %4149 = vpow2.f32 %v2291_v43  ;;  %v4034_v43 = vld [vmem:[%s5487_s13 + $0xf4] sm:$0xf0] }
 0xa26   : > { %v2280_v50 = vpop.xlane.xlu0 %2279 }
 0xa27   : > { %v2288_v52 = vsub.f32 %v2272_v1, %v2280_v50  ;;  %v4033_v50 = vld [vmem:[%s5487_s13 + $0xf4] sm:$0xf] }
 0xa29   : > { %v4150_v54 = vpop.eup %4149  ;;  %v2293_v55 = vmul.f32 1.442695, %v2288_v52  ;;  %v3739_v52 = vor.u32 %v4034_v43, %v3738_v49 }
 0xa2a   : > { %v2299_v57 = vsel %vm1430_vm5, %v4150_v54, 0.0 }
 0xa2b   : > { %4151 = vpow2.f32 %v2293_v55  ;;  %2300 = vadd.xlane.f32.xlu0 %v2299_v57  ;;  %2579 = vmatpush.bf16.msrb.mxu3 %v3739_v52 }
 0xa2e   : > { %v2283_v56 = vpop.xlane.xlu1 %2282 }
 0xa2f   : > { %v2289_v33 = vsub.f32 %v2273_v10, %v2283_v56 }
 0xa31   : > { %v4152_v58 = vpop.eup %4151  ;;  %v2295_v60 = vmul.f32 1.442695, %v2289_v33 }
 0xa32   : > { %v2302_v15 = vsel %vm1430_vm5, %v4152_v58, 0.0 }
 0xa33   : > { %4153 = vpow2.f32 %v2295_v60  ;;  %2303 = vadd.xlane.f32.xlu1 %v2302_v15  ;;  %v4032_v60 = vld [vmem:[%s5487_s13 + $0xe4] sm:$0xf0]  ;;  %v4031_v15 = vld [vmem:[%s5487_s13 + $0xe4] sm:$0xf] }
 0xa36   : > { %v2286_v61 = vpop.xlane.xlu2 %2285 }
 0xa37   : > { %v2290_v62 = vsub.f32 %v2274_v45, %v2286_v61 }
 0xa39   : > { %v4154_v2 = vpop.eup %4153  ;;  %v2297_v4 = vmul.f32 1.442695, %v2290_v62  ;;  %v3732_v62 = vld [vmem:[%s5487_s13 + $0xe8] sm:$0xf0] }
 0xa3a   : > { %v2305_v5 = vsel %vm1430_vm5, %v4154_v2, 0.0 }
 0xa3b   : > { %4155 = vpow2.f32 %v2297_v4  ;;  %2306 = vadd.xlane.f32.xlu2 %v2305_v5  ;;  %v3722_v4 = vld [vmem:[%s5487_s13 + $0xd0] sm:$0xf]  ;;  %v4030_v5 = vld [vmem:[%s5487_s13 + $0xd4] sm:$0xf0] }
 0xa41   : > { %v4156_v6 = vpop.eup %4155 }
 0xa42   : > { %v2308_v7 = vsel %vm1430_vm5, %v4156_v6, 0.0 }
 0xa43   : > { %2309 = vadd.xlane.f32.xlu0 %v2308_v7  ;;  %v3723_v7 = vor.u32 %v4030_v5, %v3722_v4 }
 0xa9e   : > { %v2301_v8 = vpop.xlane.xlu0 %2300 }
 0xa9f   : > { %4157 = vrcp.f32 %v2301_v8  ;;  %v3724_v8 = vld [vmem:[%s5487_s13 + $0xd8] sm:$0xf0] }
 0xaa5   : > { %v4158_v13 = vpop.eup %4157 }
 0xaa6   : > { %v2304_v11 = vpop.xlane.xlu1 %2303  ;;  %v2315_v3 = vmul.f32 %v4158_v13, %v4150_v54  ;;  %v3714_v13 = vld [vmem:[%s5487_s13 + $0xc0] sm:$0xf] }
 0xaa7   : > { %4159 = vrcp.f32 %v2304_v11 }
 0xaad   : > { %v4160_v14 = vpop.eup %4159 }
 0xaae   : > { %v2316_v16 = vmul.f32 %v4160_v14, %v4152_v58  ;;  %v2307_v18 = vpop.xlane.xlu2 %2306  ;;  %v3730_v58 = vld [vmem:[%s5487_s13 + $0xe0] sm:$0xf]  ;;  %v4028_v14 = vld [vmem:[%s5487_s13 + $0xc4] sm:$0xf0] }
 0xaaf   : > { %4161 = vrcp.f32 %v2307_v18  ;;  %v3731_v61 = vor.u32 %v4032_v60, %v3730_v58  ;;  %v4049_v58 = vld [vmem:[%s5489_s15 + $0xf0] sm:$0xff] }
 0xab0   : > { %v2319_v17 = vpack.c.bf16 %v2316_v16, %v2315_v3  ;;  %v4027_v3 = vld [vmem:[%s5487_s13 + $0xc4] sm:$0xf]  ;;  %v3715_v16 = vor.u32 %v4028_v14, %v3714_v13 }
 0xab1   : > { %2580 = vmatpush.bf16.msrb.mxu3 %v3731_v61  ;;  %v4047_v13 = vld [vmem:[%s5489_s15 + $0xe0] sm:$0xff] }
 0xab2   : > { %3610 = vmatmul.msk.bf16.vlgmr.msrb.gmra.mxu1 %vm1430_vm5, %v2319_v17  ;;  %v3716_v17 = vld [vmem:[%s5487_s13 + $0xc8] sm:$0xf0] }
 0xab3   : > { %v3719_v18 = vor.u32 %v4027_v3, %v3716_v17 }
 0xab5   : > { %v4162_v20 = vpop.eup %4161  ;;  %2581 = vmatpush.bf16.msrb.mxu3 %v3723_v7 }
 0xab6   : > { %v2310_v19 = vpop.xlane.xlu0 %2309  ;;  %v2317_v21 = vmul.f32 %v4162_v20, %v4154_v2  ;;  %v3735_v2 = vor.u32 %v4031_v15, %v3732_v62  ;;  %v4026_v20 = vld [vmem:[%s5487_s13 + $0xb4] sm:$0xf0] }
 0xab7   : > { %4163 = vrcp.f32 %v2310_v19  ;;  %v3706_v19 = vld [vmem:[%s5487_s13 + $0xb0] sm:$0xf]  ;;  %v4042_v15 = vld [vmem:[%s5489_s15 + $0xb8] sm:$0xff] }
 0xab8   : > { %2816 = vmatpush.bf16.msra.mxu1 %v4042_v15 }
 0xab9   : > { %2582 = vmatpush.bf16.msrb.mxu3 %v3715_v16  ;;  %v4040_v16 = vld [vmem:[%s5489_s15 + $0xa8] sm:$0xff] }
 0xabd   : > { %v4164_v46 = vpop.eup %4163 }
 0xabe   : > { %v2318_v22 = vmul.f32 %v4164_v46, %v4156_v6  ;;  %v4029_v6 = vld [vmem:[%s5487_s13 + $0xd4] sm:$0xf] }
 0xabf   : > { %v3727_v11 = vor.u32 %v4029_v6, %v3724_v8  ;;  %v4025_v46 = vld [vmem:[%s5487_s13 + $0xb4] sm:$0xf] }
 0xac0   : > { %v2320_v23 = vpack.c.bf16 %v2318_v22, %v2317_v21  ;;  %v3707_v21 = vor.u32 %v4026_v20, %v3706_v19  ;;  %v3708_v22 = vld [vmem:[%s5487_s13 + $0xb8] sm:$0xf0]  ;;  %v4041_v6 = vld [vmem:[%s5489_s15 + $0xb0] sm:$0xff] }
 0xac1   : > { %2817 = vmatpush.bf16.msra.mxu1 %v4041_v6 }
 0xac2   : > { %3611 = vmatmul.msk.bf16.gmra.mxu1 %vm1430_vm5, %v2320_v23  ;;  %v3711_v23 = vor.u32 %v4025_v46, %v3708_v22  ;;  %2583 = vmatpush.bf16.msrb.mxu3 %v3707_v21  ;;  %v4039_v46 = vld [vmem:[%s5489_s15 + $0xa0] sm:$0xff]  ;;  %v4045_v22 = vld [vmem:[%s5489_s15 + $0xd0] sm:$0xff] }
 0xac5   : > { %2818 = vmatpush.bf16.msra.mxu1 %v4040_v16 }
 0xac6   : > { %2584 = vmatpush.bf16.msrb.mxu3 %v3699_v27  ;;  %v4044_v27 = vld [vmem:[%s5489_s15 + $0xc8] sm:$0xff] }
 0xac9   : > { %2819 = vmatpush.bf16.msra.mxu1 %v4039_v46 }
 0xacd   : > { %2820 = vmatpush.bf16.msra.mxu1 %v4038_v25 }
 0xb2f   : > { %v2339_v51 = vpop.f32.mrf.mxu1 }
 0xb30   : > { %v2349_v38 = vmul.f32 %v4178_v37, %v2339_v51  ;;  %v4021_v51 = vld [vmem:[%s5487_s13 + $0x94] sm:$0xf] }
 0xb37   : > { %v2341_v32 = vpop.f32.mrf.mxu1 }
 0xb38   : > { %v2350_v59 = vmul.f32 %v4177_v63, %v2341_v32  ;;  %v3691_v32 = vor.u32 %v4022_v31, %v3690_v29  ;;  %v3682_v63 = vld [vmem:[%s5487_s13 + $0x80] sm:$0xf]  ;;  %v4037_v31 = vld [vmem:[%s5489_s15 + $0x90] sm:$0xff] }
 0xb39   : > { %2821 = vmatpush.bf16.msra.mxu1 %v4037_v31 }
 0xb3a   : > { %v2353_v0 = vadd.f32 %v2350_v59, %v2349_v38  ;;  %v4020_v59 = vld [vmem:[%s5487_s13 + $0x84] sm:$0xf0]  ;;  %v4019_v38 = vld [vmem:[%s5487_s13 + $0x84] sm:$0xf]  ;;  %2585 = vmatpush.bf16.msrb.mxu3 %v3691_v32 }
 0xb3f   : > { %v2344_v35 = vpop.f32.mrf.mxu1 }
 0xb40   : > { %v2351_v34 = vmul.f32 %v4179_v39, %v2344_v35  ;;  %v3692_v35 = vld [vmem:[%s5487_s13 + $0x98] sm:$0xf0]  ;;  %v3684_v39 = vld [vmem:[%s5487_s13 + $0x88] sm:$0xf0] }
 0xb41   : > { %v3695_v37 = vor.u32 %v4021_v51, %v3692_v35  ;;  %v4043_v35 = vld [vmem:[%s5489_s15 + $0xc0] sm:$0xff] }
 0xb42   : > { %v2354_v12 = vadd.f32 %v2353_v0, %v2351_v34  ;;  %v3683_v34 = vor.u32 %v4020_v59, %v3682_v63  ;;  %v3687_v0 = vor.u32 %v4019_v38, %v3684_v39  ;;  %v4036_v38 = vld [vmem:[%s5489_s15 + $0x88] sm:$0xff] }
 0xb43   : > { %2822 = vmatpush.bf16.msra.mxu1 %v4036_v38 }
 0xb44   : > { %2586 = vmatpush.bf16.msrb.mxu3 %v3683_v34 }
 0xb47   : > { %v2346_v1 = vpop.f32.mrf.mxu1 }
 0xb48   : > { %v2352_v9 = vmul.f32 %v4180_v40, %v2346_v1 }
 0xb4a   : > { %v2355_v10 = vadd.f32 %v2354_v12, %v2352_v9 }
 0xb4c   : > { %v2373_v41 = vpack.c.bf16 %v2355_v10, %v2355_v10 }
 0xb4e   : > { %2430 = vmatmul.bf16.vlgmr.msrb.gmra.mxu2 %v2373_v41 }
 0xbd1   : > { %v2431_v44 = vpop.f32.mrf.mxu2 }
 0xbd2   : > { %v2435_v45 = vadd.f32 %v2431_v44, %v4995_v36  ;;  %v3740_v36 = vld [vmem:[%s5487_s13 + $0xf8] sm:$0xf0] }
 0xbd3   : > { %v3743_v54 = vor.u32 %v4033_v50, %v3740_v36  ;;  %v4115_v50 = vld [vmem:[%s5486_s12 + $0x1] ss:$0 sm:$0xff] }
 0xbd4   : > { %v5218_v47 = vadd.f32 %v4113_v42, %v2435_v45 }
 0xbd5   : > { %2592 = vmatpush.bf16.msrb.mxu0 %v3743_v54 }
 0xbd6   : > { %2446 = vadd.xlane.f32.xlu1 %v5218_v47 }
 0xbd9   : > { %v2433_v48 = vpop.f32.mrf.mxu2  ;;  %2593 = vmatpush.bf16.msrb.mxu0 %v3735_v2  ;;  %v4048_v2 = vld [vmem:[%s5489_s15 + $0xe8] sm:$0xff] }
 0xbda   : > { %v4114_v48 = vld [vmem:[%s5485_s11 + $0x1] ss:$0 sm:$0xff] }
 0xbdd   : > { %2594 = vmatpush.bf16.msrb.mxu0 %v3727_v11 }
 0xbe1   : > { %2595 = vmatpush.bf16.msrb.mxu0 %v3719_v18  ;;  %v4046_v18 = vld [vmem:[%s5489_s15 + $0xd8] sm:$0xff] }
 0xbe5   : > { %2596 = vmatpush.bf16.msrb.mxu0 %v3711_v23 }
 0xbe9   : > { %2597 = vmatpush.bf16.msrb.mxu0 %v3703_v28 }
 0xbed   : > { %2598 = vmatpush.bf16.msrb.mxu0 %v3695_v37 }
 0xbf1   : > { %2599 = vmatpush.bf16.msrb.mxu0 %v3687_v0 }
 0xc49   : > { %v2447_v55 = vpop.xlane.xlu1 %2446 }
 0xc4a   : > { %v2448_v57 = vmul.f32 %v2447_v55, %v4585_v30  ;;  %v3679_v55 = vld [vmem:[%s5488_s14 + $0x2] sm:$0x3] }
 0xc4b   : > { %v2495_v62 = vperm.slane %v3679_v55, 0 }
 0xc4c   : > { %v5235_v56 = vsub.f32 %v5218_v47, %v2448_v57  ;;  %v4050_v57 = vld [vmem:[%s5489_s15 + $0xf8] sm:$0xff] }
 0xc4d   : > { %2829 = vmatpush.bf16.msra.mxu2 %v4050_v57 }
 0xc4e   : > { %v2450_v33 = vmul.f32 %v5235_v56, %v5235_v56 }
 0xc50   : > { %2451 = vadd.xlane.f32.xlu2 %v2450_v33  ;;  %v2496_v33 = vperm.slane %v3679_v55, 1 }
 0xc51   : > { %2830 = vmatpush.bf16.msra.mxu2 %v4049_v58 }
 0xc55   : > { %2831 = vmatpush.bf16.msra.mxu2 %v4048_v2 }
 0xc59   : > { %2832 = vmatpush.bf16.msra.mxu2 %v4047_v13 }
 0xc5d   : > { %2833 = vmatpush.bf16.msra.mxu2 %v4046_v18 }
 0xc61   : > { %2834 = vmatpush.bf16.msra.mxu2 %v4045_v22 }
 0xc65   : > { %2835 = vmatpush.bf16.msra.mxu2 %v4044_v27 }
 0xc69   : > { %2836 = vmatpush.bf16.msra.mxu2 %v4043_v35 }
 0xcc3   : > { %v2452_v1 = vpop.xlane.xlu2 %2451 }
 0xcc4   : > { %v2453_v12 = vmul.f32 %v2452_v1, %v4585_v30 }
 0xcc6   : > { %v2454_v40 = vadd.f32 1e-06, %v2453_v12 }
 0xcc8   : > { %4165 = vrsqrt.f32 %v2454_v40  ;;  %vm2461_vm5 = vweird.f32 %v2454_v40 }
 0xcce   : > { %v4166_v9 = vpop.eup %4165 }
 0xccf   : > { %v2456_v10 = vmul.f32 %v4166_v9, %v2454_v40  ;;  %vm2462_vm4 = vweird.f32 %v4166_v9 }
 0xcd0   : > { %vm2463_vm8 = vmor %vm2461_vm5, %vm2462_vm4 }
 0xcd1   : > { %v2457_v41 = vmul.f32 %v4166_v9, %v2456_v10 }
 0xcd3   : > { %v2458_v42 = vmul.f32 0.5, %v2457_v41  ;;  %v4035_v41 = vld [vmem:[%s5489_s15 + $0x80] sm:$0xff] }
 0xcd4   : > { %2823 = vmatpush.bf16.msra.mxu1 %v4035_v41  ;;  %v4053_v41 = vld [vmem:[%s5493_s19 + $0x10] sm:$0xff] }
 0xcd5   : > { %v2459_v44 = vsub.f32 1.5, %v2458_v42 }
 0xcd7   : > { %v2460_v45 = vmul.f32 %v4166_v9, %v2459_v44 }
 0xcd9   : > { %v2464_v49 = vsel %vm2463_vm8, %v4166_v9, %v2460_v45 }
 0xcda   : > { %v2465_v43 = vmul.f32 %v2464_v49, %v5235_v56 }
 0xcdc   : > { %v2469_v52 = vmul.f32 %v4114_v48, %v2465_v43 }
 0xcde   : > { %v2473_v36 = vadd.f32 %v4115_v50, %v2469_v52 }
 0xce0   : > { %v2491_v54 = vpack.c.bf16 %v2473_v36, %v2473_v36 }
 0xce2   : > { %2587 = vmatmul.bf16.vlgmr.msrb.gmra.mxu3 %v2491_v54  ;;  %2600 = vmatmul.bf16.vlgmr.msrb.gmra.mxu0 %v2491_v54 }
 0xd5f   : > { %v2601_v56 = vpop.f32.mrf.mxu0 }
 0xd60   : > { %v5340_v60 = vadd.f32 %v2601_v56, %v2496_v33 }
 0xd62   : > { %v5346_v61 = vmul.f32 0.70710677, %v5340_v60 }
 0xd64   : > { %v2608_v4 = vand.u32 2147483647, %v5346_v61  ;;  %vm2674_vm1 = vcmp.ge.f32.partialorder %v5346_v61, 0.0 }
 0xd65   : > { %v2588_v5 = vpop.f32.mrf.mxu3 }
 0xd66   : > { %v2610_v7 = vmul.f32 0.3275911, %v2608_v4  ;;  %v5355_v8 = vadd.f32 %v2588_v5, %v2495_v62  ;;  %v2662_v34 = vsub.f32 0.0, %v2608_v4 }
 0xd67   : > { %v2603_v11 = vpop.f32.mrf.mxu0 }
 0xd68   : > { %v2612_v14 = vadd.f32 1.0, %v2610_v7  ;;  %v5361_v3 = vmul.f32 0.70710677, %v5355_v8  ;;  %v2664_v42 = vmul.f32 %v2662_v34, %v2608_v4 }
 0xd6a   : > { %4167 = vrcp.f32 %v2612_v14  ;;  %v5367_v17 = vand.u32 2147483647, %v5361_v3  ;;  %v2639_v53 = vand.u32 2147483648, %v2612_v14  ;;  %v2637_v29 = vand.u32 2147483647, %v2612_v14 }
 0xd6b   : > { %vm2633_vm10 = vweird.f32 %v2612_v14  ;;  %v2667_v36 = vmul.f32 1.442695, %v2664_v42  ;;  %vm2673_vm2 = vcmp.ge.f32.partialorder %v5361_v3, 0.0  ;;  %v4052_v42 = vld [vmem:[%s5493_s19 + $0x8] sm:$0xff] }
 0xd6c   : > { %v2609_v19 = vmul.f32 0.3275911, %v5367_v17  ;;  %v2640_v63 = vor.u32 1.1754944e-38, %v2639_v53  ;;  %vm2638_vm12 = vcmp.eq.f32.partialorder %v2637_v29, 8.507059e+37  ;;  %v2661_v52 = vsub.f32 0.0, %v5367_v17 }
 0xd6d   : > { %v2590_v20 = vpop.f32.mrf.mxu3 }
 0xd6e   : > { %v2611_v21 = vadd.f32 1.0, %v2609_v19  ;;  %v2663_v56 = vmul.f32 %v2661_v52, %v5367_v17 }
 0xd70   : > { %v4168_v23 = vpop.eup %4167  ;;  %4169 = vrcp.f32 %v2611_v21  ;;  %v2624_v12 = vand.u32 2147483648, %v2611_v21  ;;  %v2622_v9 = vand.u32 2147483647, %v2611_v21  ;;  %vm2618_vm14 = vweird.f32 %v2611_v21 }
 0xd71   : > { %v2629_v24 = vmul.f32 %v4168_v23, %v2612_v14  ;;  %vm2634_vm9 = vweird.f32 %v4168_v23  ;;  %4171 = vpow2.f32 %v2667_v36  ;;  %v2665_v4 = vmul.f32 1.442695, %v2663_v56 }
 0xd72   : > { %vm2635_vm11 = vmor %vm2633_vm10, %vm2634_vm9  ;;  %v2625_v48 = vor.u32 1.1754944e-38, %v2624_v12  ;;  %vm2623_vm0 = vcmp.eq.f32.partialorder %v2622_v9, 8.507059e+37  ;;  %v4055_v9 = vld [vmem:[%s5493_s19 + $0x20] sm:$0xff] }
 0xd73   : > { %v2630_v26 = vsub.f32 1.0, %v2629_v24  ;;  %4173 = vpow2.f32 %v2665_v4 }
 0xd75   : > { %v2631_v28 = vmul.f32 %v4168_v23, %v2630_v26 }
 0xd76   : > { %v4170_v51 = vpop.eup %4169 }
 0xd77   : > { %v2632_v32 = vadd.f32 %v4168_v23, %v2631_v28  ;;  %v2614_v59 = vmul.f32 %v4170_v51, %v2611_v21  ;;  %vm2619_vm13 = vweird.f32 %v4170_v51  ;;  %v4172_v7 = vpop.eup %4171  ;;  %v2680_v21 = vmul.f32 0.5, %v5340_v60  ;;  %v4116_v60 = vld [vmem:[%s5490_s16 + $0x1] ss:$0 sm:$0xff] }
 0xd78   : > { %vm2620_vm15 = vmor %vm2618_vm14, %vm2619_vm13  ;;  %v2679_v28 = vmul.f32 0.5, %v5355_v8  ;;  %v4058_v8 = vld [vmem:[%s5493_s19 + $0x38] sm:$0xff] }
 0xd79   : > { %v2636_v37 = vsel %vm2635_vm11, %v4168_v23, %v2632_v32  ;;  %v2615_v0 = vsub.f32 1.0, %v2614_v59  ;;  %v4174_v17 = vpop.eup %4173  ;;  %2942 = vmatpush.bf16.msra.mxu3 %v4058_v8 }
 0xd7a   : > { %v2641_v39 = vsel %vm2638_vm12, %v2640_v63, %v2636_v37 }
 0xd7b   : > { %v2644_v1 = vmul.f32 1.0614054, %v2641_v39  ;;  %v2616_v40 = vmul.f32 %v4170_v51, %v2615_v0 }
 0xd7d   : > { %v2646_v10 = vadd.f32 -1.4531521, %v2644_v1  ;;  %v2617_v44 = vadd.f32 %v4170_v51, %v2616_v40  ;;  %v4056_v40 = vld [vmem:[%s5493_s19 + $0x28] sm:$0xff] }
 0xd7f   : > { %v2648_v45 = vmul.f32 %v2646_v10, %v2641_v39  ;;  %v2621_v49 = vsel %vm2620_vm15, %v4170_v51, %v2617_v44  ;;  %v4054_v10 = vld [vmem:[%s5493_s19 + $0x18] sm:$0xff]  ;;  %v4051_v44 = vld [vmem:[%s5493_s19] sm:$0xff] }
 0xd80   : > { %v2626_v50 = vsel %vm2623_vm0, %v2625_v48, %v2621_v49 }
 0xd81   : > { %v2650_v43 = vadd.f32 1.4214138, %v2648_v45  ;;  %v2643_v54 = vmul.f32 1.0614054, %v2626_v50 }
 0xd83   : > { %v2652_v55 = vmul.f32 %v2650_v43, %v2641_v39  ;;  %v2645_v57 = vadd.f32 -1.4531521, %v2643_v54 }
 0xd85   : > { %v2654_v33 = vadd.f32 -0.28449672, %v2652_v55  ;;  %v2647_v58 = vmul.f32 %v2645_v57, %v2626_v50 }
 0xd87   : > { %v2656_v15 = vmul.f32 %v2654_v33, %v2641_v39  ;;  %v2649_v62 = vadd.f32 1.4214138, %v2647_v58  ;;  %v2849_v33 = vld [vmem:[%s5491_s17] sm:$0x1] }
 0xd89   : > { %v2658_v2 = vadd.f32 0.2548296, %v2656_v15  ;;  %v2651_v5 = vmul.f32 %v2649_v62, %v2626_v50 }
 0xd8b   : > { %v2660_v6 = vmul.f32 %v2658_v2, %v2641_v39  ;;  %v2653_v11 = vadd.f32 -0.28449672, %v2651_v5  ;;  %v2893_v2 = vld [vmem:[%s5535_s5] sm:$0x1]  ;;  %s4201_s5 = scalar_lea.hbm %s5495_s21, 2 }
 0xd8c   : > { %p4203_p1 = scmp.lt.s32.totalorder %s4201_s5, %s4197_s7 }
 0xd8d   : > { %v2670_v13 = vmul.f32 %v4172_v7, %v2660_v6  ;;  %v2655_v14 = vmul.f32 %v2653_v11, %v2626_v50 }
 0xd8e   : > { %p4204_p2 = por %p4203_p1, %p4202_p0 }
 0xd8f   : > { %v2672_v16 = vsub.f32 1.0, %v2670_v13  ;;  %v2657_v18 = vadd.f32 0.2548296, %v2655_v14 }
 0xd90   : > { %p4205_p3 = pnand %p4204_p2, %p4200_p13 }
 0xd91   : > { %v2676_v19 = vsub.f32 0.0, %v2672_v16  ;;  %v2659_v20 = vmul.f32 %v2657_v18, %v2626_v50 }
 0xd93   : > { %v2678_v46 = vsel %vm2674_vm1, %v2672_v16, %v2676_v19  ;;  %v2669_v23 = vmul.f32 %v4174_v17, %v2659_v20 }
 0xd94   : > { %v2682_v22 = vadd.f32 1.0, %v2678_v46 }
 0xd95   : > { %v2671_v25 = vsub.f32 1.0, %v2669_v23 }
 0xd96   : > { %v2684_v24 = vmul.f32 %v2682_v22, %v2680_v21 }
 0xd97   : > { %v2675_v27 = vsub.f32 0.0, %v2671_v25 }
 0xd98   : > { %v2719_v26 = vpack.c.bf16 %v2684_v24, %v2684_v24 }
 0xd99   : > { %v2677_v53 = vsel %vm2673_vm2, %v2671_v25, %v2675_v27 }
 0xd9a   : > { %2837 = vmatmul.bf16.vlgmr.msra.gmra.mxu2 %v2719_v26  ;;  %v2681_v29 = vadd.f32 1.0, %v2677_v53 }
 0xd9c   : > { %v2683_v31 = vmul.f32 %v2681_v29, %v2679_v28 }
 0xd9e   : > { %v2718_v61 = vpack.c.bf16 %v2683_v31, %v2683_v31 }
 0xda0   : > { %2824 = vmatmul.bf16.vlgmr.msra.gmra.mxu1 %v2718_v61 }
 0xe1d   : > { %v2838_v51 = vpop.f32.mrf.mxu2  ;;  %v2825_v32 = vpop.f32.mrf.mxu1 }
 0xe1e   : > { %v2839_v35 = vadd.f32 %v2838_v51, %v2825_v32 }
 0xe20   : > { %v2842_v63 = vadd.f32 %v2839_v35, %v5218_v47  ;;  %v4057_v47 = vld [vmem:[%s5493_s19 + $0x30] sm:$0xff] }
 0xe21   : > { %2943 = vmatpush.bf16.msra.mxu3 %v4057_v47 }
 0xe22   : > { %v2848_v59 = vadd.f32 %v4116_v60, %v2842_v63 }
 0xe24   : > { %v2852_v37 = vsel %vm2851_vm3, %v2848_v59, 0.0 }
 0xe25   : > { %v2840_v3 = vpop.f32.mrf.mxu2  ;;  %v2827_v38 = vpop.f32.mrf.mxu1  ;;  %2853 = vadd.xlane.f32.xlu0 %v2852_v37  ;;  %2944 = vmatpush.bf16.msra.mxu3 %v4056_v40 }
 0xe29   : > { %2945 = vmatpush.bf16.msra.mxu3 %v4055_v9 }
 0xe2d   : > { %2946 = vmatpush.bf16.msra.mxu3 %v4054_v10 }
 0xe31   : > { %2947 = vmatpush.bf16.msra.mxu3 %v4053_v41 }
 0xe35   : > { %2948 = vmatpush.bf16.msra.mxu3 %v4052_v42 }
 0xe39   : > { %2949 = vmatpush.bf16.msra.mxu3 %v4051_v44 }
 0xe98   : > { %v2854_v39 = vpop.xlane.xlu0 %2853 }
 0xe99   : > { %v2855_v34 = vmul.f32 %v2854_v39, %v4585_v30 }
 0xe9b   : > { %v2856_v0 = vsub.f32 %v2848_v59, %v2855_v34 }
 0xe9d   : > { %v2857_v1 = vmul.f32 %v2856_v0, %v2856_v0 }
 0xe9f   : > { %v2858_v12 = vsel %vm2851_vm3, %v2857_v1, 0.0 }
 0xea0   : > { %2859 = vadd.xlane.f32.xlu1 %v2858_v12 }
 0xf13   : > { %v2860_v45 = vpop.xlane.xlu1 %2859 }
 0xf14   : > { %v2861_v48 = vmul.f32 %v2860_v45, %v4585_v30  ;;  %v2850_v30 = vld [vmem:[%s5492_s18] sm:$0x1] }
 0xf16   : > { %v2862_v49 = vadd.f32 1e-06, %v2861_v48 }
 0xf18   : > { %4175 = vrsqrt.f32 %v2862_v49  ;;  %vm2869_vm7 = vweird.f32 %v2862_v49 }
 0xf1e   : > { %v4176_v43 = vpop.eup %4175 }
 0xf1f   : > { %v2864_v50 = vmul.f32 %v4176_v43, %v2862_v49  ;;  %vm2870_vm6 = vweird.f32 %v4176_v43 }
 0xf20   : > { %vm2871_vm4 = vmor %vm2869_vm7, %vm2870_vm6 }
 0xf21   : > { %v2865_v52 = vmul.f32 %v4176_v43, %v2864_v50 }
 0xf23   : > { %v2866_v36 = vmul.f32 0.5, %v2865_v52 }
 0xf25   : > { %v2867_v54 = vsub.f32 1.5, %v2866_v36 }
 0xf27   : > { %v2868_v55 = vmul.f32 %v4176_v43, %v2867_v54 }
 0xf29   : > { %v2872_v57 = vsel %vm2871_vm4, %v4176_v43, %v2868_v55 }
 0xf2a   : > { %v2873_v56 = vmul.f32 %v2872_v57, %v2856_v0 }
 0xf2c   : > { %v2874_v58 = vmul.f32 %v2873_v56, %v2849_v33 }
 0xf2e   : > { %v2875_v15 = vadd.f32 %v2874_v58, %v2850_v30 }
 0xf30   : > { %v2892_v62 = vpack.c.bf16 %v2875_v15, %v2875_v15 }
 0xf32   : > { %2950 = vmatmul.bf16.vlgmr.msra.gmra.mxu3 %v2892_v62 }
 0xfb5   : > { %v2951_v4 = vpop.f32.mrf.mxu3 }
 0xfb6   : > { %v2952_v5 = vadd.f32 %v2951_v4, %v2893_v2 }
 0xfb8   : > { %2955 = vst [vmem:[%s648_s26] sm:$0x1] %v2952_v5 }
 0xfb9   : > { %4208 = shalt.err (!%p4205_p3)
}
 0xfba   : > { %4060 = dma.vmem_to_hbm [thread:$0]  (%p4394_p5), %s2968_s1, 16, %s2970_s6, %s2957_s4  }
 0xfbd   : > { %v2953_v6 = vpop.f32.mrf.mxu3 }
 0xfbe PF: > { %s5536_s20 = sld [smem:[#allocation7_spill]] }
 0xfbf   : > { %s5537_s27 = sld [smem:[#allocation5_spill]] }
 0xfc4   : > { %p4066_p4 = scmp.ge.s32.totalorder %s5536_s20, 2 }
 0xfc5   : > { %s2981_s26 = sand.u32 1, %s5537_s27  }
 0xfc6   : > { %p4063_p7 = pnand %p4066_p4, %p4398_p6  ;;  %s2982_s3 = scalar_lea.sflag [#allocation3], %s2981_s26 }
 0xfc8   : > { %p4064_p8 = pneg %p4063_p7 }
 0xfca   : > { %4226 = dma.done.wait (%p4064_p8), %s2982_s3, 16  }
 0xfcb   : > { %4228 = vsyncadd (%p4064_p8), %s2982_s3, 4294967280  ;;  %s5539_s27 = sld [smem:[#allocation8_spill]]  ;;  %s5542_s2 = smov %s4235_s25 }
 0xfcc   : > { %s5540_s7 = sld [smem:[#allocation6_spill]] }
 0xfcd   : > { %s5541_s26 = sld [smem:[#allocation9_spill]] }
 0xfd1   : > { %p31_p9 = scmp.ge.s32.totalorder %s5539_s27, 4  }
 0xfd2   : > { %s5543_s25 = smov %s5540_s7 }
 0xfd3   :  { %33 = sbr.rel (!%p31_p9) target bundleno = 13 (0xd), region = 151 }
 0xfd8   :  { %2987 = vsyncpa [#allocation3], 1 }
 0xfd9   :  { %2989 = vsyncpa [#allocation3 + $0x1], 1 }

</bundles_post_ra>
